<compile_context>
chip_gen: v6e
topology: v6e:2x2x1
jax: 0.10.0
libtpu: 0.0.40
codegen_flags: <defaults>
</compile_context>

<pallas_src>
import jax
import jax.numpy as jnp
from jax.experimental import pallas as pl
from jax.experimental.pallas import tpu as pltpu

P = 28 * 28          # 784
CLASSES = 10
DIM = 128            # config['hidden_dim']
N_LAYERS = 4         # config['n_layers'] -> HIDDEN_LAYERS = 2 -> one middle layer
OUT_PAD = 128        # logits padded to a lane-dense 128 columns
NEG_INF = -1e30      # bias for padded logit lanes => exp(.) == 0 in log_softmax


def _round_up(n, m):
    return (n + m - 1) // m * m


def _pick_tb(batch):
    """Tile-size heuristic: >=4 grid steps for moderate batches (2 TCs on v7x each get
    >=2 steps so the ~tb*784*4 B x-tile DMA overlaps the next step), larger tiles for
    big batches to amortize the ~0.35 us/step overhead."""
    if batch <= 512:
        tb = 128
    elif batch <= 2048:
        tb = 256
    elif batch <= 8192:
        tb = 512
    else:
        tb = 1024
    return min(tb, _round_up(batch, 8))


def _bnet_kernel(x_ref, wx_ref, w1h_ref, w2h_ref, b0_ref, b1_ref, b2_ref, out_ref):
    # x_ref: (tb, 784) f32.  wx_ref: (784, 3*DIM) bf16 = [W0 | W1x | W2x_pad].
    x = x_ref[...].astype(jnp.bfloat16)

    # Single fused x-side matmul: all three input-skip contributions at once.
    xc = jnp.dot(x, wx_ref[...], preferred_element_type=jnp.float32)    # (tb, 384) f32

    # Layer 0: 784 -> DIM, sigmoid.
    h = jax.nn.sigmoid(xc[:, 0:DIM] + b0_ref[...])

    # Layer 1: concat(h, x) -> DIM, sigmoid  (split matmul == concat matmul).
    z1 = (jnp.dot(h.astype(jnp.bfloat16), w1h_ref[...],
                  preferred_element_type=jnp.float32)
          + xc[:, DIM:2 * DIM] + b1_ref[...])
    h = jax.nn.sigmoid(z1)

    # Layer 2: concat(h, x) -> 10 classes (padded to 128 lanes), log_softmax.
    # Padded logit lanes carry a -1e30 bias so they contribute exp(.) == 0.
    logits = (jnp.dot(h.astype(jnp.bfloat16), w2h_ref[...],
                      preferred_element_type=jnp.float32)
              + xc[:, 2 * DIM:3 * DIM] + b2_ref[...])                   # (tb, 128)
    m = jnp.max(logits, axis=1, keepdims=True)
    shifted = logits - m
    lse = jnp.log(jnp.sum(jnp.exp(shifted), axis=1, keepdims=True))
    out_ref[...] = (shifted - lse).astype(out_ref.dtype)


def pack_params(params):
    """Call ONCE (at init / after a weight update), not per forward.
    bf16 cast, split the concat layers, fuse the x-side weights into one RHS,
    pad the class dim 10->128 (extra lanes get a -1e30 bias)."""
    w0, b0, w1, b1, w2, b2 = params
    w1h, w1x = w1[:DIM], w1[DIM:]
    w2h, w2x = w2[:DIM], w2[DIM:]

    def pad_cols(w, n):
        return jnp.pad(w, ((0, 0), (0, n - w.shape[1])))

    # x-side RHS: [W0 (784,128) | W1x (784,128) | W2x (784,10)->(784,128)] -> (784, 384)
    wx = jnp.concatenate([w0, w1x, pad_cols(w2x, OUT_PAD)], axis=1).astype(jnp.bfloat16)

    w1h_b = w1h.astype(jnp.bfloat16)
    w2h_b = pad_cols(w2h, OUT_PAD).astype(jnp.bfloat16)

    b0_2 = b0.reshape(1, DIM).astype(jnp.float32)
    b1_2 = b1.reshape(1, DIM).astype(jnp.float32)
    b2_2 = jnp.full((1, OUT_PAD), NEG_INF, jnp.float32)
    b2_2 = b2_2.at[0, :CLASSES].set(b2.astype(jnp.float32))
    return wx, w1h_b, w2h_b, b0_2, b1_2, b2_2


def bayesian_network_forward(x, packed_params, *, tb=None, out_dtype=jnp.float32):
    """x: (B, 1, 28, 28) or (B, 784), any float dtype. packed_params from pack_params().
    Returns log-probs (B, CLASSES). Set out_dtype=jnp.bfloat16 to halve writeback if the
    consumer tolerates it."""
    x2 = x.reshape(-1, P)
    B = x2.shape[0]
    tb = _pick_tb(B) if tb is None else min(tb, _round_up(B, 8))
    grid = pl.cdiv(B, tb)          # ragged last tile: OOB rows read garbage (row-local),
                                   # OOB output writes are dropped -> no padded rows.

    wx, w1h, w2h, b0_2, b1_2, b2_2 = packed_params

    const = lambda shape: pl.BlockSpec(shape, lambda i: (0, 0))

    out = pl.pallas_call(
        _bnet_kernel,
        out_shape=jax.ShapeDtypeStruct((B, OUT_PAD), out_dtype),
        grid_spec=pltpu.PrefetchScalarGridSpec(
            num_scalar_prefetch=0,
            grid=(grid,),
            in_specs=[
                pl.BlockSpec((tb, P), lambda i: (i, 0)),   # x tile (784 = full last dim)
                const((P, 3 * DIM)),                       # fused x-side weights
                const((DIM, DIM)),                         # W1h
                const((DIM, OUT_PAD)),                     # W2h (zero-padded cols)
                const((1, DIM)),                           # b0
                const((1, DIM)),                           # b1
                const((1, OUT_PAD)),                       # b2 (padded lanes = -1e30)
            ],
            out_specs=pl.BlockSpec((tb, OUT_PAD), lambda i: (i, 0)),
        ),
        compiler_params=pltpu.CompilerParams(
            dimension_semantics=("parallel",),
        ),
    )(x2, wx, w1h, w2h, b0_2, b1_2, b2_2)

    # Rows are exact (no batch padding); only trim the lane-padded class columns.
    return out[:, :CLASSES]


def init_params(key):
    """Deterministic init of the mean (mu) weights of each BayesianLinear."""
    k = jax.random.split(key, 6)

    def lin(kw, kb, fan_in, fan_out):
        bound = 1.0 / jnp.sqrt(fan_in)
        w = jax.random.uniform(kw, (fan_in, fan_out), jnp.float32, -bound, bound)
        b = jax.random.uniform(kb, (fan_out,), jnp.float32, -bound, bound)
        return w, b

    w0, b0 = lin(k[0], k[1], P, DIM)
    w1, b1 = lin(k[2], k[3], DIM + P, DIM)
    w2, b2 = lin(k[4], k[5], DIM + P, CLASSES)
    return (w0, b0, w1, b1, w2, b2)


def _reference_f32(x, params):
    x2 = x.reshape(-1, P).astype(jnp.float32)
    w0, b0, w1, b1, w2, b2 = params
    h = jax.nn.sigmoid(x2 @ w0 + b0)
    h = jax.nn.sigmoid(jnp.concatenate([h, x2], axis=1) @ w1 + b1)
    logits = jnp.concatenate([h, x2], axis=1) @ w2 + b2
    return jax.nn.log_softmax(logits, axis=1)


def _reference_bf16(x, params):
    # Same numerical recipe as the kernel (bf16 operands, f32 accumulation).
    x2 = x.reshape(-1, P).astype(jnp.bfloat16)
    w0, b0, w1, b1, w2, b2 = params
    dot = lambda a, b: jnp.dot(a, b.astype(jnp.bfloat16),
                               preferred_element_type=jnp.float32)
    h = jax.nn.sigmoid(dot(x2, w0) + b0)
    h = jax.nn.sigmoid(dot(h.astype(jnp.bfloat16), w1[:DIM]) + dot(x2, w1[DIM:]) + b1)
    logits = dot(h.astype(jnp.bfloat16), w2[:DIM]) + dot(x2, w2[DIM:]) + b2
    return jax.nn.log_softmax(logits, axis=1)


if __name__ == "__main__":
    key = jax.random.PRNGKey(0)
    kp, kx = jax.random.split(key)
    params = init_params(kp)
    packed = pack_params(params)          # packed ONCE, reused across forwards

    # MNIST-like input; B=300 with tb=128 -> grid = 3 (exercises the ragged last tile
    # and multi-step pipelining / megacore sharding) without any batch zero-fill.
    B = 300
    x = jax.random.uniform(kx, (B, 1, 28, 28), jnp.float32)

    out = bayesian_network_forward(x, packed)
    out = jax.block_until_ready(out)
    assert out.shape == (B, CLASSES)
    assert bool(jnp.all(jnp.isfinite(out))), "non-finite log-probs in valid rows"

    ref_lo = _reference_bf16(x, params)   # same precision recipe as the kernel
    ref_hi = _reference_f32(x, params)    # full-f32 semantic reference
    assert jnp.allclose(out, ref_lo, atol=5e-3, rtol=5e-3), "mismatch vs bf16 reference"
    assert jnp.allclose(out, ref_hi, atol=5e-2, rtol=0), "mismatch vs f32 reference"

    # TODO(synk): Bayesian sampling path (sample/ensemble=True), kl(), and BCELoss are
    # training-time machinery and are not part of this deterministic forward kernel.
    print("KERNEL_OK")
</pallas_src>

<mosaic_0001>
module attributes {stable_mosaic.version = 11 : i64} {
  func.func @_bnet_kernel(%arg0: i32, %arg1: memref<128x784xf32, #tpu.memory_space<vmem>>, %arg2: memref<784x384xbf16, #tpu.memory_space<vmem>>, %arg3: memref<128x128xbf16, #tpu.memory_space<vmem>>, %arg4: memref<128x128xbf16, #tpu.memory_space<vmem>>, %arg5: memref<1x128xf32, #tpu.memory_space<vmem>>, %arg6: memref<1x128xf32, #tpu.memory_space<vmem>>, %arg7: memref<1x128xf32, #tpu.memory_space<vmem>>, %arg8: memref<128x128xf32, #tpu.memory_space<vmem>>) attributes {dimension_semantics = [#tpu.dimension_semantics<parallel>], iteration_bounds = array<i64: 3>, scalar_prefetch = 0 : i64, scratch_operands = 0 : i64, tpu.core_type = #tpu.core_type<tc>, window_params = [{transform_indices = @transform_0, window_bounds = array<i64: 128, 784>}, {pipeline_mode = #tpu.pipeline_mode<synchronous>, transform_indices = @transform_1, window_bounds = array<i64: 784, 384>}, {pipeline_mode = #tpu.pipeline_mode<synchronous>, transform_indices = @transform_2, window_bounds = array<i64: 128, 128>}, {pipeline_mode = #tpu.pipeline_mode<synchronous>, transform_indices = @transform_3, window_bounds = array<i64: 128, 128>}, {pipeline_mode = #tpu.pipeline_mode<synchronous>, transform_indices = @transform_4, window_bounds = array<i64: 1, 128>}, {pipeline_mode = #tpu.pipeline_mode<synchronous>, transform_indices = @transform_5, window_bounds = array<i64: 1, 128>}, {pipeline_mode = #tpu.pipeline_mode<synchronous>, transform_indices = @transform_6, window_bounds = array<i64: 1, 128>}, {transform_indices = @transform_7, window_bounds = array<i64: 128, 128>}]} {
    %c0 = arith.constant 0 : index
    %c0_0 = arith.constant 0 : index
    %0 = vector.load %arg1[%c0, %c0_0] : memref<128x784xf32, #tpu.memory_space<vmem>>, vector<128x784xf32>
    %1 = arith.truncf %0 : vector<128x784xf32> to vector<128x784xbf16>
    %c0_1 = arith.constant 0 : index
    %c0_2 = arith.constant 0 : index
    %2 = vector.load %arg2[%c0_1, %c0_2] : memref<784x384xbf16, #tpu.memory_space<vmem>>, vector<784x384xbf16>
    %cst = arith.constant dense<0.000000e+00> : vector<128x384xf32>
    %3 = tpu.matmul %1, %2, %cst {dimension_numbers = #tpu.dot_dimension_numbers<[1], [0], [0], [1], [0, 0, 1, 1], [], []>} : vector<128x784xbf16>, vector<784x384xbf16>, vector<128x384xf32> -> vector<128x384xf32>
    %4 = vector.extract_strided_slice %3 {offsets = [0, 0], sizes = [128, 128], strides = [1, 1]} : vector<128x384xf32> to vector<128x128xf32>
    %c0_3 = arith.constant 0 : index
    %c0_4 = arith.constant 0 : index
    %5 = vector.load %arg5[%c0_3, %c0_4] : memref<1x128xf32, #tpu.memory_space<vmem>>, vector<1x128xf32>
    %6 = vector.broadcast %5 : vector<1x128xf32> to vector<128x128xf32>
    %7 = arith.addf %4, %6 : vector<128x128xf32>
    %8 = arith.negf %7 : vector<128x128xf32>
    %9 = math.exp %8 : vector<128x128xf32>
    %cst_5 = arith.constant 1.000000e+00 : f32
    %10 = vector.broadcast %cst_5 : f32 to vector<128x128xf32>
    %11 = arith.addf %10, %9 : vector<128x128xf32>
    %12 = arith.divf %10, %11 : vector<128x128xf32>
    %13 = arith.truncf %12 : vector<128x128xf32> to vector<128x128xbf16>
    %c0_6 = arith.constant 0 : index
    %c0_7 = arith.constant 0 : index
    %14 = vector.load %arg3[%c0_6, %c0_7] : memref<128x128xbf16, #tpu.memory_space<vmem>>, vector<128x128xbf16>
    %cst_8 = arith.constant dense<0.000000e+00> : vector<128x128xf32>
    %15 = tpu.matmul %13, %14, %cst_8 {dimension_numbers = #tpu.dot_dimension_numbers<[1], [0], [0], [1], [0, 0, 1, 1], [], []>} : vector<128x128xbf16>, vector<128x128xbf16>, vector<128x128xf32> -> vector<128x128xf32>
    %16 = vector.extract_strided_slice %3 {offsets = [0, 128], sizes = [128, 128], strides = [1, 1]} : vector<128x384xf32> to vector<128x128xf32>
    %17 = arith.addf %15, %16 : vector<128x128xf32>
    %c0_9 = arith.constant 0 : index
    %c0_10 = arith.constant 0 : index
    %18 = vector.load %arg6[%c0_9, %c0_10] : memref<1x128xf32, #tpu.memory_space<vmem>>, vector<1x128xf32>
    %19 = vector.broadcast %18 : vector<1x128xf32> to vector<128x128xf32>
    %20 = arith.addf %17, %19 : vector<128x128xf32>
    %21 = arith.negf %20 : vector<128x128xf32>
    %22 = math.exp %21 : vector<128x128xf32>
    %cst_11 = arith.constant 1.000000e+00 : f32
    %23 = vector.broadcast %cst_11 : f32 to vector<128x128xf32>
    %24 = arith.addf %23, %22 : vector<128x128xf32>
    %25 = arith.divf %23, %24 : vector<128x128xf32>
    %26 = arith.truncf %25 : vector<128x128xf32> to vector<128x128xbf16>
    %c0_12 = arith.constant 0 : index
    %c0_13 = arith.constant 0 : index
    %27 = vector.load %arg4[%c0_12, %c0_13] : memref<128x128xbf16, #tpu.memory_space<vmem>>, vector<128x128xbf16>
    %cst_14 = arith.constant dense<0.000000e+00> : vector<128x128xf32>
    %28 = tpu.matmul %26, %27, %cst_14 {dimension_numbers = #tpu.dot_dimension_numbers<[1], [0], [0], [1], [0, 0, 1, 1], [], []>} : vector<128x128xbf16>, vector<128x128xbf16>, vector<128x128xf32> -> vector<128x128xf32>
    %29 = vector.extract_strided_slice %3 {offsets = [0, 256], sizes = [128, 128], strides = [1, 1]} : vector<128x384xf32> to vector<128x128xf32>
    %30 = arith.addf %28, %29 : vector<128x128xf32>
    %c0_15 = arith.constant 0 : index
    %c0_16 = arith.constant 0 : index
    %31 = vector.load %arg7[%c0_15, %c0_16] : memref<1x128xf32, #tpu.memory_space<vmem>>, vector<1x128xf32>
    %32 = vector.broadcast %31 : vector<1x128xf32> to vector<128x128xf32>
    %33 = arith.addf %30, %32 : vector<128x128xf32>
    %cst_17 = arith.constant dense<0xFF800000> : vector<128xf32>
    %34 = vector.multi_reduction <maximumf>, %33, %cst_17 [1] : vector<128x128xf32> to vector<128xf32>
    %35 = vector.shape_cast %34 : vector<128xf32> to vector<128x1xf32>
    %36 = vector.broadcast %35 : vector<128x1xf32> to vector<128x128xf32>
    %37 = arith.subf %33, %36 : vector<128x128xf32>
    %38 = math.exp %37 : vector<128x128xf32>
    %cst_18 = arith.constant dense<0.000000e+00> : vector<128xf32>
    %39 = vector.multi_reduction <add>, %38, %cst_18 [1] : vector<128x128xf32> to vector<128xf32>
    %40 = vector.shape_cast %39 : vector<128xf32> to vector<128x1xf32>
    %41 = math.log %40 : vector<128x1xf32>
    %42 = vector.broadcast %41 : vector<128x1xf32> to vector<128x128xf32>
    %43 = arith.subf %37, %42 : vector<128x128xf32>
    %c0_19 = arith.constant 0 : index
    %c0_20 = arith.constant 0 : index
    %44 = vector.load %arg8[%c0_19, %c0_20] : memref<128x128xf32, #tpu.memory_space<vmem>>, vector<128x128xf32>
    tpu.vector_store %arg8[%c0_19, %c0_20], %43 {strides = array<i32>} : memref<128x128xf32, #tpu.memory_space<vmem>>, vector<128x128xf32>,
    return
  }
  func.func @transform_0(%arg0: i32) -> (i32, i32) {
    %c0_i32 = arith.constant 0 : i32
    %c0_i32_0 = arith.constant 0 : i32
    return %arg0, %c0_i32 : i32, i32
  }
  func.func @transform_1(%arg0: i32) -> (i32, i32) {
    %c0_i32 = arith.constant 0 : i32
    %c0_i32_0 = arith.constant 0 : i32
    %c0_i32_1 = arith.constant 0 : i32
    return %c0_i32, %c0_i32_0 : i32, i32
  }
  func.func @transform_2(%arg0: i32) -> (i32, i32) {
    %c0_i32 = arith.constant 0 : i32
    %c0_i32_0 = arith.constant 0 : i32
    %c0_i32_1 = arith.constant 0 : i32
    return %c0_i32, %c0_i32_0 : i32, i32
  }
  func.func @transform_3(%arg0: i32) -> (i32, i32) {
    %c0_i32 = arith.constant 0 : i32
    %c0_i32_0 = arith.constant 0 : i32
    %c0_i32_1 = arith.constant 0 : i32
    return %c0_i32, %c0_i32_0 : i32, i32
  }
  func.func @transform_4(%arg0: i32) -> (i32, i32) {
    %c0_i32 = arith.constant 0 : i32
    %c0_i32_0 = arith.constant 0 : i32
    %c0_i32_1 = arith.constant 0 : i32
    return %c0_i32, %c0_i32_0 : i32, i32
  }
  func.func @transform_5(%arg0: i32) -> (i32, i32) {
    %c0_i32 = arith.constant 0 : i32
    %c0_i32_0 = arith.constant 0 : i32
    %c0_i32_1 = arith.constant 0 : i32
    return %c0_i32, %c0_i32_0 : i32, i32
  }
  func.func @transform_6(%arg0: i32) -> (i32, i32) {
    %c0_i32 = arith.constant 0 : i32
    %c0_i32_0 = arith.constant 0 : i32
    %c0_i32_1 = arith.constant 0 : i32
    return %c0_i32, %c0_i32_0 : i32, i32
  }
  func.func @transform_7(%arg0: i32) -> (i32, i32) {
    %c0_i32 = arith.constant 0 : i32
    %c0_i32_0 = arith.constant 0 : i32
    return %arg0, %c0_i32 : i32, i32
  }
}

</mosaic_0001>

<bundles_post_ra>
// kernel: tpu_custom_call.1
= control target key start
LH: loop header
LB: loop body
LE: loop exit
PB: predicated region body
PF: predicated region fallthrough
CT: control target
= control target key end

     0   :  { %s5914_s0 = inlined_call_operand.hbm [shape: f32[300,784], index: 0, kind: input, shape index: {}]   ;;  %s5915_s1 = inlined_call_operand.hbm [shape: bf16[784,384], index: 1, kind: input, shape index: {}]   ;;  %s5916_s2 = inlined_call_operand.hbm [shape: bf16[128,128], index: 2, kind: input, shape index: {}]   ;;  %s5917_s3 = inlined_call_operand.hbm [shape: bf16[128,128], index: 3, kind: input, shape index: {}]   ;;  %s5918_s4 = inlined_call_operand.hbm [shape: f32[1,128], index: 4, kind: input, shape index: {}]   ;;  %s5919_s5 = inlined_call_operand.hbm [shape: f32[1,128], index: 5, kind: input, shape index: {}]   ;;  %s5920_s6 = inlined_call_operand.hbm [shape: f32[1,128], index: 6, kind: input, shape index: {}]   ;;  %s5921_s7 = inlined_call_operand.hbm [shape: f32[300,128], index: 7, kind: output, shape index: {}]  }
   0x1   :  { %5930 = sst [smem:[#allocation24_spill]] %s5915_s1 }
   0x2   :  { %12 = vsyncpa [#allocation3], 0 }
   0x3   :  { %14 = vsyncpa [#allocation3 + $0x1], 0 }
   0x4   :  { %15 = vsyncpa [#allocation6], 0 }
   0x5   :  { %16 = vsyncpa [#allocation9], 0 }
   0x6   :  { %17 = vsyncpa [#allocation12], 0 }
   0x7   :  { %18 = vsyncpa [#allocation4], 0 }
   0x8   :  { %20 = vsyncpa [#allocation4 + $0x1], 0  ;;  %s4764_s24 = smov 0   ;;  %s4766_s25 = smov 0  }
   0x9   :  { %s4768_s26 = smov 0   ;;  %s4770_s27 = smov 0  }
   0xa LB: > { %s4785_s28 = sadd.s32 4294967295, %s4705_s27   ;;  %s3336_s29 = sadd.s32 4294967294, %s4705_s27   ;;  %s4705_s27 = sphi %s4770_s27, %s5968_s27   ;;  %s4701_s26 = sphi %s4768_s26, %s5967_s26   ;;  %s4697_s25 = sphi %s4766_s25, %s5966_s25   ;;  %s4693_s24 = sphi %s4764_s24, %s5965_s24  }
   0xb   : > { %s4789_s30 = sadd.s32 1, %s4705_s27   ;;  %s33_s8 = sadd.s32 1, %s4701_s26 }
   0xc   : > { %s30_s9 = ssub.s32 %s4705_s27, %s4789_s30  ;;  %p40_p0 = scmp.ne.s32.totalorder %s4701_s26, %s4697_s25 }
   0xd   : > { %p31_p1 = scmp.eq.s32.totalorder %s30_s9, 0  ;;  %p41_p2 = scmp.eq.s32.totalorder %s4705_s27, 0 }
   0xe   : > { %p46_p3 = scmp.ne.s32.totalorder %s4697_s25, %s4693_s24  ;;  %p5922_p4 = scmp.eq.s32.totalorder %s4785_s28, 0 }
   0xf   : > { %s4801_s10 = scalar_select %p31_p1, %s4701_s26, %s33_s8  }
  0x10   : > { %p4803_p5 = por %p41_p2, %p40_p0  ;;  %p4809_p6 = por %p5922_p4, %p46_p3 }
  0x11   : > { %5931 = sst [smem:[#allocation20_spill]] %s4801_s10  ;;  %p196_p7 = scmp.eq.s32.totalorder %s4785_s28, 2 }
  0x12   : > { %s5932_s11 = scalar_select %p4803_p5, 1, 0 }
  0x13   : > { %s5933_s12 = scalar_select %p4809_p6, 1, 0 }
  0x14   : > { %p202_p8 = scmp.eq.s32.totalorder %s3336_s29, 2  ;;  %p3337_p9 = scmp.ge.s32.totalorder %s4705_s27, 1 }
  0x15   : > { %p209_p10 = scmp.lt.s32.totalorder %s4705_s27, 4  ;;  %p4816_p11 = por %p196_p7, %p40_p0 }
  0x16   : > { %p4820_p12 = por %p202_p8, %p46_p3  ;;  %s4707_s16 = smov [#allocation5]  }
  0x17   : > { %s5934_s13 = scalar_select %p4816_p11, 1, 0 }
  0x18   : > { %s5935_s14 = scalar_select %p4820_p12, 1, 0 }
  0x19   : > { %p4824_p13 = pnand %p3337_p9, %p209_p10  ;;  %s221_s17 = sshll.u32 %s4707_s16, 4  ;;  %s222_s17 = int_to_ptr.vmem [resolvable:$true] %s221_s17 }
  0x1a   : > { %s4708_s19 = smov [#allocation8]   ;;  %s4458_s22 = scalar_lea.vmem %s222_s17, 18816 }
  0x1b   : > { %s5936_s15 = scalar_select %p4824_p13, 1, 0 }
  0x1c   : > { %p3960_p1 = pneg %p4824_p13  ;;  %s247_s20 = sshll.u32 %s4708_s19, 4  ;;  %s248_s20 = int_to_ptr.vmem [resolvable:$true] %s247_s20 }
  0x1d   : > { %p4459_p3 = scmp.ne.s32.totalorder %s222_s17, %s4458_s22  ;;  %p4466_p9 = scmp.lt.s32.totalorder %s222_s17, %s222_s17 }
  0x1e   : > { %p4832_p2 = pnand %p3960_p1, %p5922_p4  ;;  %p4467_p10 = scmp.lt.s32.totalorder %s4458_s22, %s4458_s22 }
  0x20   : > { %p4838_p0 = pneg %p4832_p2  ;;  %p4468_p1 = por %p4467_p10, %p4466_p9 }
  0x22   : > { %p4461_p7 = pnand %p4459_p3, %p4838_p0 }
  0x24   : > { %p4462_p8 = pneg %p4461_p7 }
  0x26   : > { %p4469_p4 = pnand %p4468_p1, %p4462_p8 }
  0x28   : > { %4472 = shalt.err (!%p4469_p4)
}
  0x29   : > { %s4709_s23 = smov 192   ;;  %s4710_s29 = smov 12  }
  0x2a   : > { %s5939_s1 = sld [smem:[#allocation24_spill]]  ;;  %s4484_s16 = scalar_lea.vmem %s248_s20, 1024 }
  0x2b   : > { %p4485_p12 = scmp.ne.s32.totalorder %s248_s20, %s4484_s16  ;;  %p4492_p11 = scmp.lt.s32.totalorder %s248_s20, %s248_s20 }
  0x2c   : > { %p4493_p6 = scmp.lt.s32.totalorder %s4484_s16, %s4484_s16 }
  0x2d   : > { %p4487_p3 = pnand %p4485_p12, %p4838_p0 }
  0x2e   : > { %p4494_p9 = por %p4493_p6, %p4492_p11 }
  0x2f   : > { %p4488_p7 = pneg %p4487_p3 }
  0x30   : > { %3963 = dma.hbm_to_vmem [thread:$0]  (!%p4832_p2), %s5939_s1, 18816, %s222_s17, [#allocation6], %s4709_s23, %s4709_s23, %s4710_s29  }
  0x31   : > { %p4495_p8 = pnand %p4494_p9, %p4488_p7 }
  0x33   : > { %4498 = shalt.err (!%p4495_p8)
}
  0x34   : > { %s4711_s19 = smov 64   ;;  %s4712_s22 = smov 4  }
  0x35   : > { %3969 = dma.hbm_to_vmem [thread:$0]  (!%p4832_p2), %s5917_s3, 1024, %s248_s20, [#allocation9], %s4711_s19, %s4711_s19, %s4712_s22  }
  0x36   : > { %s4713_s29 = smov [#allocation11]   ;;  %s4714_s9 = smov [#allocation7]  }
  0x37   : > { %s272_s8 = sshll.u32 %s4713_s29, 4  ;;  %s234_s16 = sshll.u32 %s4714_s9, 4  ;;  %s273_s8 = int_to_ptr.vmem [resolvable:$true] %s272_s8  ;;  %s235_s16 = int_to_ptr.vmem [resolvable:$true] %s234_s16 }
  0x38   : > { %s4510_s1 = scalar_lea.vmem %s273_s8, 16  ;;  %s4517_s10 = scalar_lea.vmem %s273_s8, 32 }
  0x39   : > { %p4511_p4 = scmp.ne.s32.totalorder %s273_s8, %s4510_s1  ;;  %p4518_p12 = scmp.lt.s32.totalorder %s273_s8, %s273_s8 }
  0x3a   : > { %p4519_p10 = scmp.lt.s32.totalorder %s4517_s10, %s4510_s1 }
  0x3b   : > { %p4513_p6 = pnand %p4511_p4, %p4838_p0 }
  0x3c   : > { %p4520_p1 = por %p4519_p10, %p4518_p12 }
  0x3d   : > { %p4514_p11 = pneg %p4513_p6 }
  0x3f   : > { %p4521_p3 = pnand %p4520_p1, %p4514_p11 }
  0x41   : > { %4524 = shalt.err (!%p4521_p3)
}
  0x42   : > { %3975 = dma.hbm_to_vmem [thread:$0]  (!%p4832_p2), %s5919_s5, 16, %s273_s8, [#allocation12]  }
  0x43   : > { %s4536_s23 = scalar_lea.vmem %s235_s16, 1024  ;;  %p4544_p4 = scmp.lt.s32.totalorder %s235_s16, %s235_s16 }
  0x44   : > { %p4537_p7 = scmp.ne.s32.totalorder %s235_s16, %s4536_s23  ;;  %p4545_p6 = scmp.lt.s32.totalorder %s4536_s23, %s4536_s23 }
  0x46   : > { %p4539_p9 = pnand %p4537_p7, %p4838_p0  ;;  %p4546_p13 = por %p4545_p6, %p4544_p4 }
  0x48   : > { %p4540_p8 = pneg %p4539_p9 }
  0x4a   : > { %p4547_p5 = pnand %p4546_p13, %p4540_p8 }
  0x4c   : > { %4550 = shalt.err (!%p4547_p5)
}
  0x4d   : > { %3966 = dma.hbm_to_vmem [thread:$0]  (!%p4832_p2), %s5916_s2, 1024, %s235_s16, [#allocation6], %s4711_s19, %s4711_s19, %s4712_s22  }
  0x4e   : > { %s4715_s29 = smov [#allocation10]   ;;  %s4716_s9 = smov [#allocation13]  }
  0x4f   : > { %s261_s8 = sshll.u32 %s4715_s29, 4  ;;  %s283_s17 = sshll.u32 %s4716_s9, 4  ;;  %s262_s8 = int_to_ptr.vmem [resolvable:$true] %s261_s8  ;;  %s284_s17 = int_to_ptr.vmem [resolvable:$true] %s283_s17 }
  0x50   : > { %s4562_s20 = scalar_lea.vmem %s262_s8, 16  ;;  %s4569_s23 = scalar_lea.vmem %s262_s8, 32 }
  0x51   : > { %p4563_p11 = scmp.ne.s32.totalorder %s262_s8, %s4562_s20  ;;  %p4570_p12 = scmp.lt.s32.totalorder %s262_s8, %s262_s8 }
  0x52   : > { %p4571_p10 = scmp.lt.s32.totalorder %s4569_s23, %s4562_s20 }
  0x53   : > { %p4565_p13 = pnand %p4563_p11, %p4838_p0 }
  0x54   : > { %p4572_p1 = por %p4571_p10, %p4570_p12 }
  0x55   : > { %p4566_p5 = pneg %p4565_p13 }
  0x57   : > { %p4573_p3 = pnand %p4572_p1, %p4566_p5 }
  0x59   : > { %4576 = shalt.err (!%p4573_p3)
}
  0x5a   : > { %3972 = dma.hbm_to_vmem [thread:$0]  (!%p4832_p2), %s5918_s4, 16, %s262_s8, [#allocation9]  }
  0x5b   : > { %s4588_s22 = scalar_lea.vmem %s284_s17, 16  ;;  %s4595_s16 = scalar_lea.vmem %s284_s17, 32 }
  0x5c   : > { %p4589_p7 = scmp.ne.s32.totalorder %s284_s17, %s4588_s22  ;;  %p4596_p4 = scmp.lt.s32.totalorder %s284_s17, %s284_s17 }
  0x5d   : > { %p4597_p6 = scmp.lt.s32.totalorder %s4595_s16, %s4588_s22 }
  0x5e   : > { %p4591_p9 = pnand %p4589_p7, %p4838_p0 }
  0x5f   : > { %p4598_p11 = por %p4597_p6, %p4596_p4 }
  0x60   : > { %p4592_p8 = pneg %p4591_p9 }
  0x62   : > { %p4599_p13 = pnand %p4598_p11, %p4592_p8 }
  0x64   : > { %4602 = shalt.err (!%p4599_p13)
}
  0x65   : > { %3978 = dma.hbm_to_vmem [thread:$0]  (!%p4832_p2), %s5920_s6, 16, %s284_s17, [#allocation12]  }
  0x66   : > { %p3344_p5 = scmp.ge.s32.totalorder %s4705_s27, 3 }
  0x67   : > { %p5940_p12 = scmp.ne.s32.totalorder (!%p3344_p5), %s5932_s11, 0 }
  0x68   : > { %290 = sbr.rel (%p3344_p5) target bundleno = 143 (0x8f), region = 40 }
  0x6d   : > { %293 = sbr.rel (!%p5940_p12) target bundleno = 143 (0x8f), region = 44  ;;  %s294_s21 = sand.u32 (%p5940_p12), 1, %s4701_s26  }
  0x6e   : > { %s3345_s8 = sshll.u32 (%p5940_p12), %s4705_s27, 4  ;;  %s3931_s9 = smul.u32 (%p5940_p12), 896, %s294_s21 }
  0x6f   : > { %s300_s20 = ssub.s32 (%p5940_p12), 38, %s3345_s8  ;;  %s4898_s1 = scalar_lea.sflag (%p5940_p12), [#allocation3], %s294_s21 }
  0x70   : > { %p301_p0 = scmp.lt.s32.totalorder (%p5940_p12), %s300_s20, 16  ;;  %s298_s17 = scalar_lea.vmem (%p5940_p12), [#allocation2], %s3931_s9 }
  0x72   : > { %s5970_s20 = smov (!%p301_p0, %s300_s20), 16 }
  0x73   : > { %s4895_s23 = smul.u32 896, %s5970_s20 }
  0x75   : > { %s306_s18 = ssub.s32 14336, %s4895_s23 }
  0x76   : > { %307 = vsyncadd %s4898_s1, %s306_s18  ;;  %p3348_p2 = scmp.ne.s32.totalorder %s4895_s23, 0  ;;  %s3932_s11 = smul.u32 14336, %s4705_s27 }
  0x77   : > { %s313_s19 = sshll.u32 %s298_s17, 4  ;;  %s4607_s9 = scalar_lea.hbm %s5914_s0, 34048  ;;  %s4908_s19 = int_to_ptr.vmem [resolvable:$true] %s313_s19 }
  0x78   : > { %s4906_s10 = scalar_lea.hbm %s5914_s0, %s3932_s11 }
  0x79   : > { %s4603_s29 = scalar_lea.hbm %s4906_s10, %s4895_s23  ;;  %p4608_p7 = scmp.lt.s32.totalorder %s4906_s10, %s5914_s0 }
  0x7a   : > { %p4604_p10 = scmp.ne.s32.totalorder %s4906_s10, %s4603_s29  ;;  %p4609_p9 = scmp.lt.s32.totalorder %s4607_s9, %s4603_s29 }
  0x7c   : > { %p4605_p1 = pnand %p4604_p10, %p3348_p2  ;;  %p4610_p8 = por %p4609_p9, %p4608_p7 }
  0x7e   : > { %p4606_p3 = pneg %p4605_p1 }
  0x80   : > { %p4611_p4 = pnand %p4610_p8, %p4606_p3 }
  0x82   : > { %4614 = shalt.err (!%p4611_p4)
}
  0x83   : > { %s4615_s17 = scalar_lea.vmem %s4908_s19, %s4895_s23  ;;  %s4717_s11 = smov [#allocation2]  }
  0x84   : > { %p4616_p6 = scmp.ne.s32.totalorder %s4908_s19, %s4615_s17  ;;  %s4619_s22 = sshll.u32 %s4717_s11, 4  ;;  %s4620_s22 = int_to_ptr.vmem [resolvable:$false] %s4619_s22 }
  0x85   : > { %s4621_s16 = scalar_lea.vmem %s4620_s22, 28672  ;;  %p4622_p5 = scmp.lt.s32.totalorder %s4908_s19, %s4620_s22 }
  0x86   : > { %p4617_p11 = pnand %p4616_p6, %p3348_p2  ;;  %p4623_p12 = scmp.lt.s32.totalorder %s4621_s16, %s4615_s17 }
  0x88   : > { %p4618_p13 = pneg %p4617_p11  ;;  %p4624_p0 = por %p4623_p12, %p4622_p5 }
  0x8a   : > { %p4625_p10 = pnand %p4624_p0, %p4618_p13 }
  0x8c   : > { %4628 = shalt.err (!%p4625_p10)
}
  0x8d   : > { %s4718_s29 = smov 896   ;;  %s4719_s21 = smov 56  }
  0x8e   : > { %319 = dma.hbm_to_vmem [thread:$0]  (%p3348_p2), %s4906_s10, %s4895_s23, %s4908_s19, %s4898_s1, %s4718_s29, %s4718_s29, %s4719_s21  }
  0x8f PF: > { %p5941_p1 = scmp.ne.s32.totalorder %s5936_s15, 0 }
  0x91   : > { %325 = sbr.rel (%p5941_p1) target bundleno = 1387 (0x56b), region = 48 }
  0x96   : > { %s4937_s8 = sand.u32 1, %s4697_s25   ;;  %p5942_p3 = scmp.ne.s32.totalorder %s5933_s12, 0 }
  0x97   : > { %s3933_s9 = smul.u32 896, %s4937_s8  ;;  %s328_s20 = scalar_lea.sflag [#allocation3], %s4937_s8 }
  0x99   : > { %s4941_s18 = scalar_lea.vmem [#allocation2], %s3933_s9 }
  0x9a   : > { %4672 = dma.done.wait (%p5942_p3), %s328_s20, 14336  }
  0x9b   : > { %4674 = vsyncadd (%p5942_p3), %s328_s20, 4294952960  ;;  %p5943_p2 = scmp.eq.s32.totalorder %s4785_s28, 0 }
  0x9d   : > { %4676 = dma.done.wait (%p5943_p2), [#allocation6], 19840   ;;  %p5944_p7 = pmov %p5943_p2 }
  0x9e   : > { %p5945_p9 = pmov %p5943_p2 }
  0x9f   : > { %4678 = vsyncadd (%p5944_p7), [#allocation6], 4294947456 }
  0xa0   : > { %4680 = dma.done.wait (%p5945_p9), [#allocation9], 1040   ;;  %p5946_p8 = pmov %p5943_p2 }
  0xa1   : > { %p5947_p4 = pmov %p5943_p2 }
  0xa2   : > { %4682 = vsyncadd (%p5946_p8), [#allocation9], 4294966256 }
  0xa3   : > { %4684 = dma.done.wait (%p5947_p4), [#allocation12], 32   ;;  %p5948_p6 = pmov %p5943_p2 }
  0xa4   : > { %v4043_v0 = vld [vmem:[#allocation5 + $0xac] ss:$12 sps:$4 sm:$0xff]   ;;  %v4047_v2 = vld [vmem:[#allocation5 + $0xa8] ss:$12 sps:$4 sm:$0xff]   ;;  %v4053_v6 = vld [vmem:[#allocation5 + $0x90] ss:$12 sps:$4 sm:$0xff]  }
  0xa5   : > { %4686 = vsyncadd (%p5948_p6), [#allocation12], 4294967264  ;;  %v4045_v1 = vld [vmem:[#allocation5 + $0x22c] ss:$12 sps:$4 sm:$0xff]   ;;  %1571 = vmatprep.subr.bf16.mxu0 %v4043_v0  ;;  %v4048_v3 = vld [vmem:[#allocation5 + $0x228] ss:$12 sps:$4 sm:$0xff]  }
  0xa6   : > { %1684 = vmatprep.subr.bf16.mxu1 %v4045_v1  ;;  %v4049_v4 = vld [vmem:[#allocation5 + $0x94] ss:$12 sps:$4 sm:$0xff]   ;;  %1572 = vmatpush1.bf16.msra.mxu0 %v4047_v2  ;;  %v4054_v7 = vld [vmem:[#allocation5 + $0x210] ss:$12 sps:$4 sm:$0xff]   ;;  %v4059_v10 = vld [vmem:[#allocation5 + $0x78] ss:$12 sps:$4 sm:$0xff]  }
  0xa7   : > { %1685 = vmatpush1.bf16.msra.mxu1 %v4048_v3  ;;  %v4051_v5 = vld [vmem:[#allocation5 + $0x214] ss:$12 sps:$4 sm:$0xff]   ;;  %1573 = vmatprep.subr.bf16.mxu0 %v4049_v4  ;;  %v4055_v8 = vld [vmem:[#allocation5 + $0x7c] ss:$12 sps:$4 sm:$0xff]   ;;  %v4060_v11 = vld [vmem:[#allocation5 + $0x1f8] ss:$12 sps:$4 sm:$0xff]  }
  0xa8   : > { %1686 = vmatprep.subr.bf16.mxu1 %v4051_v5  ;;  %v4057_v9 = vld [vmem:[#allocation5 + $0x1fc] ss:$12 sps:$4 sm:$0xff]   ;;  %v4061_v12 = vld [vmem:[#allocation5 + $0x64] ss:$12 sps:$4 sm:$0xff]   ;;  %v4065_v14 = vld [vmem:[#allocation5 + $0x60] ss:$12 sps:$4 sm:$0xff]  }
  0xa9   : > { %v4063_v13 = vld [vmem:[#allocation5 + $0x1e4] ss:$12 sps:$4 sm:$0xff]   ;;  %v4066_v15 = vld [vmem:[#allocation5 + $0x1e0] ss:$12 sps:$4 sm:$0xff]   ;;  %v4071_v18 = vld [vmem:[#allocation5 + $0x48] ss:$12 sps:$4 sm:$0xff]  }
  0xaa   : > { %1574 = vmatpush1.bf16.msra.mxu0 %v4053_v6  ;;  %v4067_v16 = vld [vmem:[#allocation5 + $0x4c] ss:$12 sps:$4 sm:$0xff]   ;;  %v4072_v19 = vld [vmem:[#allocation5 + $0x1c8] ss:$12 sps:$4 sm:$0xff]   ;;  %v4077_v22 = vld [vmem:[#allocation5 + $0x30] ss:$12 sps:$4 sm:$0xff]  }
  0xab   : > { %1687 = vmatpush1.bf16.msra.mxu1 %v4054_v7  ;;  %1575 = vmatprep.subr.bf16.mxu0 %v4055_v8  ;;  %v4069_v17 = vld [vmem:[#allocation5 + $0x1cc] ss:$12 sps:$4 sm:$0xff]   ;;  %v4073_v20 = vld [vmem:[#allocation5 + $0x34] ss:$12 sps:$4 sm:$0xff]   ;;  %v4078_v23 = vld [vmem:[#allocation5 + $0x1b0] ss:$12 sps:$4 sm:$0xff]  }
  0xac   : > { %1688 = vmatprep.subr.bf16.mxu1 %v4057_v9  ;;  %v4075_v21 = vld [vmem:[#allocation5 + $0x1b4] ss:$12 sps:$4 sm:$0xff]   ;;  %v4079_v24 = vld [vmem:[#allocation5 + $0x1c] ss:$12 sps:$4 sm:$0xff]   ;;  %v4083_v26 = vld [vmem:[#allocation5 + $0x18] ss:$12 sps:$4 sm:$0xff]  }
  0xad   : > { %v4081_v25 = vld [vmem:[#allocation5 + $0x19c] ss:$12 sps:$4 sm:$0xff]   ;;  %v4084_v27 = vld [vmem:[#allocation5 + $0x198] ss:$12 sps:$4 sm:$0xff]   ;;  %v4089_v30 = vld [vmem:[#allocation5] ss:$12 sps:$4 sm:$0xff]  }
  0xae   : > { %1576 = vmatpush1.bf16.msra.mxu0 %v4059_v10  ;;  %v4085_v28 = vld [vmem:[#allocation5 + $0x4] ss:$12 sps:$4 sm:$0xff]   ;;  %v4090_v31 = vld [vmem:[#allocation5 + $0x180] ss:$12 sps:$4 sm:$0xff]   ;;  %v4095_v34 = vld [vmem:[#allocation5 + $0x168] ss:$12 sps:$4 sm:$0xff]  }
  0xaf   : > { %1689 = vmatpush1.bf16.msra.mxu1 %v4060_v11  ;;  %1577 = vmatprep.subr.bf16.mxu0 %v4061_v12  ;;  %v4087_v29 = vld [vmem:[#allocation5 + $0x184] ss:$12 sps:$4 sm:$0xff]   ;;  %v4091_v32 = vld [vmem:[#allocation5 + $0x16c] ss:$12 sps:$4 sm:$0xff]   ;;  %v4096_v35 = vld [vmem:[#allocation5 + $0x2e8] ss:$12 sps:$4 sm:$0xff]  }
  0xb0   : > { %1690 = vmatprep.subr.bf16.mxu1 %v4063_v13  ;;  %v4093_v33 = vld [vmem:[#allocation5 + $0x2ec] ss:$12 sps:$4 sm:$0xff]   ;;  %v4097_v36 = vld [vmem:[#allocation5 + $0x154] ss:$12 sps:$4 sm:$0xff]   ;;  %v4101_v38 = vld [vmem:[#allocation5 + $0x150] ss:$12 sps:$4 sm:$0xff]  }
  0xb1   : > { %v4099_v37 = vld [vmem:[#allocation5 + $0x2d4] ss:$12 sps:$4 sm:$0xff]   ;;  %v4102_v39 = vld [vmem:[#allocation5 + $0x2d0] ss:$12 sps:$4 sm:$0xff]   ;;  %v4107_v42 = vld [vmem:[#allocation5 + $0x138] ss:$12 sps:$4 sm:$0xff]  }
  0xb2   : > { %1578 = vmatpush1.bf16.msra.mxu0 %v4065_v14  ;;  %v4103_v40 = vld [vmem:[#allocation5 + $0x13c] ss:$12 sps:$4 sm:$0xff]   ;;  %v4108_v43 = vld [vmem:[#allocation5 + $0x2b8] ss:$12 sps:$4 sm:$0xff]   ;;  %v408_v49 = vld [vmem:[%s4941_s18 + $0x50] sm:$0xff]  ;;  %vm1546_vm0 = vcmask 130048  }
  0xb3   : > { %1691 = vmatpush1.bf16.msra.mxu1 %v4066_v15  ;;  %1579 = vmatprep.subr.bf16.mxu0 %v4067_v16  ;;  %v4105_v41 = vld [vmem:[#allocation5 + $0x2bc] ss:$12 sps:$4 sm:$0xff]   ;;  %v4109_v44 = vld [vmem:[#allocation5 + $0x124] ss:$12 sps:$4 sm:$0xff]   ;;  %v4113_v50 = vld [vmem:[#allocation5 + $0x120] ss:$12 sps:$4 sm:$0xff]  }
  0xb4   : > { %1692 = vmatprep.subr.bf16.mxu1 %v4069_v17  ;;  %v4111_v45 = vld [vmem:[#allocation5 + $0x2a4] ss:$12 sps:$4 sm:$0xff]   ;;  %v399_v46 = vld [vmem:[%s4941_s18 + $0x8] sm:$0xff]  ;;  %v401_v48 = vld [vmem:[%s4941_s18 + $0x18] sm:$0xff]  ;;  %s3359_s12 = sshll.u32 %s4937_s8, 7  ;;  %s3187_s23 = scalar_lea.sflag [#allocation4], %s4937_s8 }
  0xb5   : > { %v406_v47 = vld [vmem:[%s4941_s18 + $0x40] sm:$0xff]  ;;  %v4115_v52 = vld [vmem:[#allocation5 + $0x10c] ss:$12 sps:$4 sm:$0xff]   ;;  %v4965_v54 = vpack.c.bf16 %v408_v49, %v401_v48  ;;  %v4119_v56 = vld [vmem:[#allocation5 + $0x108] ss:$12 sps:$4 sm:$0xff]   ;;  %s5820_s15 = scalar_lea.vmem [#allocation14], %s3359_s12 }
  0xb6   : > { %1580 = vmatpush1.bf16.msra.mxu0 %v4071_v18  ;;  %v4114_v51 = vld [vmem:[#allocation5 + $0x2a0] ss:$12 sps:$4 sm:$0xff]   ;;  %v4963_v53 = vpack.c.bf16 %v406_v47, %v399_v46  ;;  %v4120_v57 = vld [vmem:[#allocation5 + $0x288] ss:$12 sps:$4 sm:$0xff]   ;;  %v4125_v60 = vld [vmem:[#allocation5 + $0xf0] ss:$12 sps:$4 sm:$0xff]  }
  0xb7   : > { %1693 = vmatpush1.bf16.msra.mxu1 %v4072_v19  ;;  %1581 = vmatprep.subr.bf16.mxu0 %v4073_v20  ;;  %v4117_v55 = vld [vmem:[#allocation5 + $0x28c] ss:$12 sps:$4 sm:$0xff]   ;;  %v4121_v58 = vld [vmem:[#allocation5 + $0xf4] ss:$12 sps:$4 sm:$0xff]   ;;  %v4126_v61 = vld [vmem:[#allocation5 + $0x270] ss:$12 sps:$4 sm:$0xff]  }
  0xb8   : > { %1694 = vmatprep.subr.bf16.mxu1 %v4075_v21  ;;  %1603 = vmatprep.mubr.bf16.mxu0 %v4963_v53  ;;  %v4123_v59 = vld [vmem:[#allocation5 + $0x274] ss:$12 sps:$4 sm:$0xff]   ;;  %v4127_v62 = vld [vmem:[#allocation5 + $0xdc] ss:$12 sps:$4 sm:$0xff]   ;;  %v4131_v0 = vld [vmem:[#allocation5 + $0xd8] ss:$12 sps:$4 sm:$0xff]  }
  0xb9   : > { %1716 = vmatprep.mubr.bf16.mxu1 %v4965_v54  ;;  %v4129_v63 = vld [vmem:[#allocation5 + $0x25c] ss:$12 sps:$4 sm:$0xff]   ;;  %v4132_v1 = vld [vmem:[#allocation5 + $0x258] ss:$12 sps:$4 sm:$0xff]   ;;  %v4137_v4 = vld [vmem:[#allocation5 + $0xc0] ss:$12 sps:$4 sm:$0xff]  }
  0xba   : > { %1582 = vmatpush1.bf16.msra.mxu0 %v4077_v22  ;;  %v4133_v2 = vld [vmem:[#allocation5 + $0xc4] ss:$12 sps:$4 sm:$0xff]   ;;  %v4138_v5 = vld [vmem:[#allocation5 + $0x240] ss:$12 sps:$4 sm:$0xff]   ;;  %v405_v7 = vld [vmem:[%s4941_s18 + $0x38] sm:$0xff]  ;;  %p5962_p11 = scmp.ne.s32.totalorder %s5934_s13, 0 }
  0xbb   : > { %1695 = vmatpush1.bf16.msra.mxu1 %v4078_v23  ;;  %1583 = vmatprep.subr.bf16.mxu0 %v4079_v24  ;;  %v4135_v3 = vld [vmem:[#allocation5 + $0x244] ss:$12 sps:$4 sm:$0xff]   ;;  %v407_v9 = vld [vmem:[%s4941_s18 + $0x48] sm:$0xff]  ;;  %v413_v11 = vld [vmem:[%s4941_s18 + $0x78] sm:$0xff]  ;;  %s3575_s1 = sshll.u32 (%p5962_p11), %s4785_s28, 4 }
  0xbc   : > { %1696 = vmatprep.subr.bf16.mxu1 %v4081_v25  ;;  %v398_v6 = vld [vmem:[%s4941_s18] sm:$0xff]  ;;  %v400_v8 = vld [vmem:[%s4941_s18 + $0x10] sm:$0xff]  ;;  %v4141_v10 = vld [vmem:[#allocation5 + $0x3ac] ss:$12 sps:$4 sm:$0xff]   ;;  %s3195_s19 = ssub.s32 (%p5962_p11), 38, %s3575_s1 }
  0xbd   : > { %v420_v12 = vld [vmem:[%s4941_s18 + $0xb0] sm:$0xff]  ;;  %v4975_v13 = vpack.c.bf16 %v405_v7, %v398_v6  ;;  %v4977_v14 = vpack.c.bf16 %v407_v9, %v400_v8  ;;  %v415_v15 = vld [vmem:[%s4941_s18 + $0x88] sm:$0xff]  ;;  %v422_v16 = vld [vmem:[%s4941_s18 + $0xc0] sm:$0xff]  ;;  %p3196_p13 = scmp.lt.s32.totalorder (%p5962_p11), %s3195_s19, 16 }
  0xbe   : > { %1584 = vmatpush1.bf16.msra.mxu0 %v4083_v26  ;;  %v4139_v17 = vld [vmem:[#allocation5 + $0x3a8] ss:$12 sps:$4 sm:$0xff]   ;;  %v4142_v19 = vld [vmem:[#allocation5 + $0x390] ss:$12 sps:$4 sm:$0xff]   ;;  %v4981_v20 = vpack.c.bf16 %v420_v12, %v413_v11  ;;  %v4983_v21 = vpack.c.bf16 %v422_v16, %v415_v15  ;;  %v414_v24 = vld [vmem:[%s4941_s18 + $0x80] sm:$0xff] }
  0xbf   : > { %1697 = vmatpush1.bf16.msra.mxu1 %v4084_v27  ;;  %1585 = vmatprep.subr.bf16.mxu0 %v4085_v28  ;;  %v4144_v18 = vld [vmem:[#allocation5 + $0x394] ss:$12 sps:$4 sm:$0xff]   ;;  %v419_v23 = vld [vmem:[%s4941_s18 + $0xa8] sm:$0xff]  ;;  %v421_v25 = vld [vmem:[%s4941_s18 + $0xb8] sm:$0xff] }
  0xc0   : > { %1698 = vmatprep.subr.bf16.mxu1 %v4087_v29  ;;  %v412_v22 = vld [vmem:[%s4941_s18 + $0x70] sm:$0xff]  ;;  %v4147_v26 = vld [vmem:[#allocation5 + $0x37c] ss:$12 sps:$4 sm:$0xff]   ;;  %v4996_v29 = vpack.c.bf16 %v421_v25, %v414_v24  ;;  %v450_v48 = vld [vmem:[%s4941_s18 + $0x1a0] sm:$0xff] }
  0xc1   : > { %v427_v27 = vld [vmem:[%s4941_s18 + $0xe8] sm:$0xff]  ;;  %v4994_v28 = vpack.c.bf16 %v419_v23, %v412_v22  ;;  %v454_v8 = vld [vmem:[%s4941_s18 + $0x1c0] sm:$0xff]  ;;  %v461_v9 = vld [vmem:[%s4941_s18 + $0x1f8] sm:$0xff] }
  0xc2   : > { %1586 = vmatpush1.bf16.msra.mxu0 %v4089_v30  ;;  %v434_v30 = vld [vmem:[%s4941_s18 + $0x120] sm:$0xff]  ;;  %v443_v47 = vld [vmem:[%s4941_s18 + $0x168] sm:$0xff]  ;;  %v469_v15 = vld [vmem:[%s4941_s18 + $0x238] sm:$0xff]  ;;  %v5054_v16 = vpack.c.bf16 %v461_v9, %v454_v8 }
  0xc3   : > { %1699 = vmatpush1.bf16.msra.mxu1 %v4090_v31  ;;  %1587 = vmatprep.subr.bf16.mxu0 %v4091_v32  ;;  %v429_v31 = vld [vmem:[%s4941_s18 + $0xf8] sm:$0xff]  ;;  %v436_v32 = vld [vmem:[%s4941_s18 + $0x130] sm:$0xff]  ;;  %v4160_v7 = vld [vmem:[#allocation5 + $0x300] ss:$12 sps:$4 sm:$0xff]  }
  0xc4   : > { %1700 = vmatprep.subr.bf16.mxu1 %v4093_v33  ;;  %v4145_v33 = vld [vmem:[#allocation5 + $0x378] ss:$12 sps:$4 sm:$0xff]   ;;  %v4151_v49 = vld [vmem:[#allocation5 + $0x348] ss:$12 sps:$4 sm:$0xff]  }
  0xc5   : > { %v463_v11 = vld [vmem:[%s4941_s18 + $0x208] sm:$0xff]  ;;  %v478_v22 = vld [vmem:[%s4941_s18 + $0x280] sm:$0xff] }
  0xc6   : > { %1588 = vmatpush2.bf16.msra.mxu0 %v4095_v34  ;;  %v4150_v34 = vld [vmem:[#allocation5 + $0x364] ss:$12 sps:$4 sm:$0xff]   ;;  %v4165_v12 = vld [vmem:[#allocation5 + $0x46c] ss:$12 sps:$4 sm:$0xff]   ;;  %v4163_v23 = vld [vmem:[#allocation5 + $0x468] ss:$12 sps:$4 sm:$0xff]  }
  0xc7   : > { %1701 = vmatpush2.bf16.msra.mxu1 %v4096_v35  ;;  %1589 = vmatprep.subr.bf16.mxu0 %v4097_v36  ;;  %v5001_v35 = vpack.c.bf16 %v434_v30, %v427_v27  ;;  %v5003_v36 = vpack.c.bf16 %v436_v32, %v429_v31  ;;  %v4168_v24 = vld [vmem:[#allocation5 + $0x454] ss:$12 sps:$4 sm:$0xff]   ;;  %v4166_v27 = vld [vmem:[#allocation5 + $0x450] ss:$12 sps:$4 sm:$0xff]   ;;  %v475_v31 = vld [vmem:[%s4941_s18 + $0x268] sm:$0xff] }
  0xc8   : > { %1702 = vmatprep.subr.bf16.mxu1 %v4099_v37  ;;  %v4148_v37 = vld [vmem:[#allocation5 + $0x360] ss:$12 sps:$4 sm:$0xff]   ;;  %v468_v30 = vld [vmem:[%s4941_s18 + $0x230] sm:$0xff] }
  0xc9   : > { %v470_v32 = vld [vmem:[%s4941_s18 + $0x240] sm:$0xff] }
  0xca   : > { %1590 = vmatpush2.bf16.msra.mxu0 %v4101_v38  ;;  %v426_v38 = vld [vmem:[%s4941_s18 + $0xe0] sm:$0xff] }
  0xcb   : > { %1703 = vmatpush2.bf16.msra.mxu1 %v4102_v39  ;;  %1591 = vmatprep.subr.bf16.mxu0 %v4103_v40  ;;  %v433_v39 = vld [vmem:[%s4941_s18 + $0x118] sm:$0xff]  ;;  %v428_v40 = vld [vmem:[%s4941_s18 + $0xf0] sm:$0xff] }
  0xcc   : > { %1704 = vmatprep.subr.bf16.mxu1 %v4105_v41  ;;  %v435_v41 = vld [vmem:[%s4941_s18 + $0x128] sm:$0xff] }
  0xcd   : > { %v5017_v46 = vpack.c.bf16 %v435_v41, %v428_v40  ;;  %v5076_v40 = vpack.c.bf16 %v475_v31, %v468_v30  ;;  %v494_v30 = vld [vmem:[%s4941_s18 + $0x300] sm:$0xff] }
  0xce   : > { %1592 = vmatpush2.bf16.msra.mxu0 %v4107_v42  ;;  %v4153_v42 = vld [vmem:[#allocation5 + $0x34c] ss:$12 sps:$4 sm:$0xff]  }
  0xcf   : > { %1705 = vmatpush2.bf16.msra.mxu1 %v4108_v43  ;;  %1593 = vmatprep.subr.bf16.mxu0 %v4109_v44  ;;  %v441_v43 = vld [vmem:[%s4941_s18 + $0x158] sm:$0xff]  ;;  %v448_v44 = vld [vmem:[%s4941_s18 + $0x190] sm:$0xff] }
  0xd0   : > { %1706 = vmatprep.subr.bf16.mxu1 %v4111_v45  ;;  %v5015_v45 = vpack.c.bf16 %v433_v39, %v426_v38  ;;  %v490_v38 = vld [vmem:[%s4941_s18 + $0x2e0] sm:$0xff]  ;;  %v485_v39 = vld [vmem:[%s4941_s18 + $0x2b8] sm:$0xff] }
  0xd1   : > { %v4181_v31 = vld [vmem:[#allocation5 + $0x3d8] ss:$12 sps:$4 sm:$0xff]  }
  0xd2   : > { %1594 = vmatpush2.bf16.msra.mxu0 %v4113_v50  ;;  %v4156_v50 = vld [vmem:[#allocation5 + $0x334] ss:$12 sps:$4 sm:$0xff]  }
  0xd3   : > { %1707 = vmatpush2.bf16.msra.mxu1 %v4114_v51  ;;  %1595 = vmatprep.subr.bf16.mxu0 %v4115_v52  ;;  %v4154_v51 = vld [vmem:[#allocation5 + $0x330] ss:$12 sps:$4 sm:$0xff]   ;;  %v5021_v52 = vpack.c.bf16 %v448_v44, %v441_v43  ;;  %v4169_v43 = vld [vmem:[#allocation5 + $0x438] ss:$12 sps:$4 sm:$0xff]  }
  0xd4   : > { %1708 = vmatprep.subr.bf16.mxu1 %v4117_v55  ;;  %v5023_v55 = vpack.c.bf16 %v450_v48, %v443_v47  ;;  %v4174_v44 = vld [vmem:[#allocation5 + $0x424] ss:$12 sps:$4 sm:$0xff]   ;;  %v4172_v47 = vld [vmem:[#allocation5 + $0x420] ss:$12 sps:$4 sm:$0xff]  }
  0xd6   : > { %1596 = vmatpush2.bf16.msra.mxu0 %v4119_v56  ;;  %v440_v56 = vld [vmem:[%s4941_s18 + $0x150] sm:$0xff] }
  0xd7   : > { %1709 = vmatpush2.bf16.msra.mxu1 %v4120_v57  ;;  %1597 = vmatprep.subr.bf16.mxu0 %v4121_v58  ;;  %v447_v57 = vld [vmem:[%s4941_s18 + $0x188] sm:$0xff]  ;;  %v442_v58 = vld [vmem:[%s4941_s18 + $0x160] sm:$0xff] }
  0xd8   : > { %1710 = vmatprep.subr.bf16.mxu1 %v4123_v59  ;;  %v449_v59 = vld [vmem:[%s4941_s18 + $0x198] sm:$0xff] }
  0xda   : > { %1598 = vmatpush2.bf16.msra.mxu0 %v4125_v60  ;;  %v4159_v60 = vld [vmem:[#allocation5 + $0x31c] ss:$12 sps:$4 sm:$0xff]  }
  0xdb   : > { %1711 = vmatpush2.bf16.msra.mxu1 %v4126_v61  ;;  %1599 = vmatprep.subr.bf16.mxu0 %v4127_v62  ;;  %v455_v61 = vld [vmem:[%s4941_s18 + $0x1c8] sm:$0xff]  ;;  %v5034_v62 = vpack.c.bf16 %v447_v57, %v440_v56  ;;  %v484_v56 = vld [vmem:[%s4941_s18 + $0x2b0] sm:$0xff] }
  0xdc   : > { %1712 = vmatprep.subr.bf16.mxu1 %v4129_v63  ;;  %v5036_v63 = vpack.c.bf16 %v449_v59, %v442_v58  ;;  %v491_v57 = vld [vmem:[%s4941_s18 + $0x2e8] sm:$0xff]  ;;  %v497_v59 = vld [vmem:[%s4941_s18 + $0x318] sm:$0xff] }
  0xdd   : > { %v4177_v58 = vld [vmem:[#allocation5 + $0x40c] ss:$12 sps:$4 sm:$0xff]  }
  0xde   : > { %1600 = vmatpush2.bf16.msra.mxu0 %v4131_v0  ;;  %v462_v0 = vld [vmem:[%s4941_s18 + $0x200] sm:$0xff] }
  0xdf   : > { %1713 = vmatpush2.bf16.msra.mxu1 %v4132_v1  ;;  %1601 = vmatprep.subr.bf16.mxu0 %v4133_v2  ;;  %v457_v1 = vld [vmem:[%s4941_s18 + $0x1d8] sm:$0xff]  ;;  %v464_v2 = vld [vmem:[%s4941_s18 + $0x210] sm:$0xff] }
  0xe0   : > { %1714 = vmatprep.subr.bf16.mxu1 %v4135_v3  ;;  %v4157_v3 = vld [vmem:[#allocation5 + $0x318] ss:$12 sps:$4 sm:$0xff]   ;;  %v5043_v6 = vpack.c.bf16 %v464_v2, %v457_v1  ;;  %v5098_v1 = vpack.c.bf16 %v491_v57, %v484_v56  ;;  %v4190_v56 = vld [vmem:[#allocation5 + $0x170] ss:$12 sps:$4 sm:$0xff]  }
  0xe1   : > { %v506_v2 = vld [vmem:[%s4941_s18 + $0x360] sm:$0xff]  ;;  %v508_v57 = vld [vmem:[%s4941_s18 + $0x370] sm:$0xff] }
  0xe2   : > { %1602 = vmatpush2.bf16.msra.mxu0 %v4137_v4  ;;  %v4162_v4 = vld [vmem:[#allocation5 + $0x304] ss:$12 sps:$4 sm:$0xff]  }
  0xe3   : > { %1715 = vmatpush2.bf16.msra.mxu1 %v4138_v5  ;;  %1797 = vmatprep.subr.bf16.mxu0 %v4141_v10  ;;  %v5041_v5 = vpack.c.bf16 %v462_v0, %v455_v61  ;;  %v499_v61 = vld [vmem:[%s4941_s18 + $0x328] sm:$0xff] }
  0xe4   : > { %3899 = vmatprep.subr.bf16.mxu1 %v4141_v10  ;;  %v456_v10 = vld [vmem:[%s4941_s18 + $0x1d0] sm:$0xff]  ;;  %v5103_v9 = vpack.c.bf16 %v506_v2, %v499_v61 }
  0xe5   : > { %1604 = vmatmul.mubr.bf16.vlgmr.msra.gmra.mxu0 %v4975_v13  ;;  %v4191_v2 = vld [vmem:[#allocation5 + $0xb0] ss:$12 sps:$4 sm:$0xff]  }
  0xe6   : > { %1717 = vmatmul.mubr.bf16.vlgmr.msra.gmra.mxu1 %v4977_v14  ;;  %1798 = vmatpush1.bf16.msra.mxu0 %v4139_v17 }
  0xe7   : > { %3915 = vmatpush1.bf16.msra.mxu1 %v4139_v17  ;;  %1799 = vmatprep.subr.bf16.mxu0 %v4144_v18  ;;  %v5056_v17 = vpack.c.bf16 %v463_v11, %v456_v10  ;;  %v496_v10 = vld [vmem:[%s4941_s18 + $0x310] sm:$0xff]  ;;  %v503_v11 = vld [vmem:[%s4941_s18 + $0x348] sm:$0xff] }
  0xe8   : > { %3900 = vmatprep.subr.bf16.mxu1 %v4144_v18  ;;  %1613 = vmatprep.mubr.bf16.mxu0 %v4981_v20  ;;  %v476_v18 = vld [vmem:[%s4941_s18 + $0x270] sm:$0xff] }
  0xe9   : > { %1726 = vmatprep.mubr.bf16.mxu1 %v4983_v21  ;;  %v5061_v25 = vpack.c.bf16 %v476_v18, %v469_v15  ;;  %v505_v15 = vld [vmem:[%s4941_s18 + $0x358] sm:$0xff] }
  0xea   : > { %1800 = vmatpush1.bf16.msra.mxu0 %v4142_v19  ;;  %v4183_v18 = vld [vmem:[#allocation5 + $0x3dc] ss:$12 sps:$4 sm:$0xff]  }
  0xeb   : > { %3916 = vmatpush1.bf16.msra.mxu1 %v4142_v19  ;;  %1801 = vmatprep.subr.bf16.mxu0 %v4147_v26  ;;  %v471_v19 = vld [vmem:[%s4941_s18 + $0x248] sm:$0xff] }
  0xec   : > { %3901 = vmatprep.subr.bf16.mxu1 %v4147_v26  ;;  %v5063_v26 = vpack.c.bf16 %v478_v22, %v471_v19  ;;  %v403_v19 = vld [vmem:[%s4941_s18 + $0x28] sm:$0xff]  ;;  %v410_v22 = vld [vmem:[%s4941_s18 + $0x60] sm:$0xff] }
  0xed   : > { %1614 = vmatmul.mubr.bf16.gmra.mxu0 %v4994_v28 }
  0xee   : > { %1727 = vmatmul.mubr.bf16.gmra.mxu1 %v4996_v29  ;;  %1802 = vmatpush1.bf16.msra.mxu0 %v4145_v33 }
  0xef   : > { %3917 = vmatpush1.bf16.msra.mxu1 %v4145_v33  ;;  %1803 = vmatprep.subr.bf16.mxu0 %v4150_v34  ;;  %v477_v33 = vld [vmem:[%s4941_s18 + $0x278] sm:$0xff] }
  0xf0   : > { %3902 = vmatprep.subr.bf16.mxu1 %v4150_v34  ;;  %1623 = vmatprep.mubr.bf16.mxu0 %v5001_v35  ;;  %v4171_v34 = vld [vmem:[#allocation5 + $0x43c] ss:$12 sps:$4 sm:$0xff]   ;;  %v5078_v41 = vpack.c.bf16 %v477_v33, %v470_v32  ;;  %v4186_v32 = vld [vmem:[#allocation5 + $0x3c4] ss:$12 sps:$4 sm:$0xff]   ;;  %v4184_v33 = vld [vmem:[#allocation5 + $0x3c0] ss:$12 sps:$4 sm:$0xff]  }
  0xf1   : > { %1736 = vmatprep.mubr.bf16.mxu1 %v5003_v36 }
  0xf2   : > { %1804 = vmatpush1.bf16.msra.mxu0 %v4148_v37 }
  0xf3   : > { %3918 = vmatpush1.bf16.msra.mxu1 %v4148_v37  ;;  %1805 = vmatprep.subr.bf16.mxu0 %v4153_v42  ;;  %v483_v37 = vld [vmem:[%s4941_s18 + $0x2a8] sm:$0xff] }
  0xf4   : > { %3903 = vmatprep.subr.bf16.mxu1 %v4153_v42  ;;  %v492_v42 = vld [vmem:[%s4941_s18 + $0x2f0] sm:$0xff]  ;;  %v5081_v48 = vpack.c.bf16 %v490_v38, %v483_v37  ;;  %v402_v38 = vld [vmem:[%s4941_s18 + $0x20] sm:$0xff] }
  0xf5   : > { %1624 = vmatmul.mubr.bf16.gmra.mxu0 %v5015_v45 }
  0xf6   : > { %1737 = vmatmul.mubr.bf16.gmra.mxu1 %v5017_v46  ;;  %1806 = vmatpush1.bf16.msra.mxu0 %v4151_v49 }
  0xf7   : > { %3919 = vmatpush1.bf16.msra.mxu1 %v4151_v49  ;;  %1807 = vmatprep.subr.bf16.mxu0 %v4156_v50  ;;  %v5083_v49 = vpack.c.bf16 %v492_v42, %v485_v39  ;;  %v409_v39 = vld [vmem:[%s4941_s18 + $0x58] sm:$0xff]  ;;  %v486_v42 = vld [vmem:[%s4941_s18 + $0x2c0] sm:$0xff] }
  0xf8   : > { %3904 = vmatprep.subr.bf16.mxu1 %v4156_v50  ;;  %1633 = vmatprep.mubr.bf16.mxu0 %v5021_v52  ;;  %v482_v50 = vld [vmem:[%s4941_s18 + $0x2a0] sm:$0xff] }
  0xf9   : > { %1746 = vmatprep.mubr.bf16.mxu1 %v5023_v55 }
  0xfa   : > { %1808 = vmatpush1.bf16.msra.mxu0 %v4154_v51 }
  0xfb   : > { %3920 = vmatpush1.bf16.msra.mxu1 %v4154_v51  ;;  %1809 = vmatprep.subr.bf16.mxu0 %v4159_v60  ;;  %v489_v51 = vld [vmem:[%s4941_s18 + $0x2d8] sm:$0xff] }
  0xfc   : > { %3905 = vmatprep.subr.bf16.mxu1 %v4159_v60  ;;  %v504_v60 = vld [vmem:[%s4941_s18 + $0x350] sm:$0xff]  ;;  %v5096_v0 = vpack.c.bf16 %v489_v51, %v482_v50  ;;  %v501_v51 = vld [vmem:[%s4941_s18 + $0x338] sm:$0xff] }
  0xfd   : > { %1634 = vmatmul.mubr.bf16.gmra.mxu0 %v5034_v62  ;;  %v5101_v8 = vpack.c.bf16 %v504_v60, %v497_v59  ;;  %v424_v50 = vld [vmem:[%s4941_s18 + $0xd0] sm:$0xff]  ;;  %v4187_v60 = vld [vmem:[#allocation5 + $0x480] ss:$12 sps:$4 sm:$0xff]  }
  0xfe   : > { %1747 = vmatmul.mubr.bf16.gmra.mxu1 %v5036_v63  ;;  %1810 = vmatpush1.bf16.msra.mxu0 %v4157_v3 }
  0xff   : > { %3921 = vmatpush1.bf16.msra.mxu1 %v4157_v3  ;;  %1811 = vmatprep.subr.bf16.mxu0 %v4162_v4  ;;  %v4175_v3 = vld [vmem:[#allocation5 + $0x408] ss:$12 sps:$4 sm:$0xff]  }
 0x100   : > { %3906 = vmatprep.subr.bf16.mxu1 %v4162_v4  ;;  %1643 = vmatprep.mubr.bf16.mxu0 %v5041_v5  ;;  %v4180_v4 = vld [vmem:[#allocation5 + $0x3f4] ss:$12 sps:$4 sm:$0xff]  }
 0x101   : > { %1756 = vmatprep.mubr.bf16.mxu1 %v5043_v6 }
 0x102   : > { %1812 = vmatpush1.bf16.msra.mxu0 %v4160_v7 }
 0x103   : > { %3922 = vmatpush1.bf16.msra.mxu1 %v4160_v7  ;;  %1813 = vmatprep.subr.bf16.mxu0 %v4165_v12  ;;  %v4178_v7 = vld [vmem:[#allocation5 + $0x3f0] ss:$12 sps:$4 sm:$0xff]  }
 0x104   : > { %3907 = vmatprep.subr.bf16.mxu1 %v4165_v12  ;;  %v498_v12 = vld [vmem:[%s4941_s18 + $0x320] sm:$0xff] }
 0x105   : > { %1644 = vmatmul.mubr.bf16.gmra.mxu0 %v5054_v16 }
 0x106   : > { %1757 = vmatmul.mubr.bf16.gmra.mxu1 %v5056_v17  ;;  %1814 = vmatpush2.bf16.msra.mxu0 %v4163_v23 }
 0x107   : > { %3923 = vmatpush2.bf16.msra.mxu1 %v4163_v23  ;;  %1815 = vmatprep.subr.bf16.mxu0 %v4168_v24  ;;  %v487_v23 = vld [vmem:[%s4941_s18 + $0x2c8] sm:$0xff] }
 0x108   : > { %3908 = vmatprep.subr.bf16.mxu1 %v4168_v24  ;;  %1653 = vmatprep.mubr.bf16.mxu0 %v5061_v25  ;;  %v5116_v24 = vpack.c.bf16 %v503_v11, %v496_v10  ;;  %v5123_v37 = vpack.c.bf16 %v494_v30, %v487_v23  ;;  %v423_v10 = vld [vmem:[%s4941_s18 + $0xc8] sm:$0xff]  ;;  %v500_v11 = vld [vmem:[%s4941_s18 + $0x330] sm:$0xff] }
 0x109   : > { %1766 = vmatprep.mubr.bf16.mxu1 %v5063_v26  ;;  %v4196_v23 = vld [vmem:[#allocation5 + $0x140] ss:$12 sps:$4 sm:$0xff]  }
 0x10a   : > { %1816 = vmatpush2.bf16.msra.mxu0 %v4166_v27 }
 0x10b   : > { %3924 = vmatpush2.bf16.msra.mxu1 %v4166_v27  ;;  %1817 = vmatprep.subr.bf16.mxu0 %v4171_v34  ;;  %v5118_v27 = vpack.c.bf16 %v505_v15, %v498_v12  ;;  %v507_v12 = vld [vmem:[%s4941_s18 + $0x368] sm:$0xff]  ;;  %v4193_v15 = vld [vmem:[#allocation5 + $0x2f0] ss:$12 sps:$4 sm:$0xff]  }
 0x10c   : > { %3909 = vmatprep.subr.bf16.mxu1 %v4171_v34  ;;  %v5121_v34 = vpack.c.bf16 %v410_v22, %v403_v19  ;;  %v438_v19 = vld [vmem:[%s4941_s18 + $0x140] sm:$0xff] }
 0x10d   : > { %1654 = vmatmul.mubr.bf16.gmra.mxu0 %v5076_v40  ;;  %v4194_v22 = vld [vmem:[#allocation5 + $0x98] ss:$12 sps:$4 sm:$0xff]  }
 0x10e   : > { %1767 = vmatmul.mubr.bf16.gmra.mxu1 %v5078_v41  ;;  %1818 = vmatpush2.bf16.msra.mxu0 %v4169_v43 }
 0x10f   : > { %3925 = vmatpush2.bf16.msra.mxu1 %v4169_v43  ;;  %1819 = vmatprep.subr.bf16.mxu0 %v4174_v44  ;;  %v493_v43 = vld [vmem:[%s4941_s18 + $0x2f8] sm:$0xff] }
 0x110   : > { %3910 = vmatprep.subr.bf16.mxu1 %v4174_v44  ;;  %1663 = vmatprep.mubr.bf16.mxu0 %v5081_v48  ;;  %v4189_v44 = vld [vmem:[#allocation5 + $0x484] ss:$12 sps:$4 sm:$0xff]   ;;  %v5139_v59 = vpack.c.bf16 %v493_v43, %v486_v42  ;;  %v437_v42 = vld [vmem:[%s4941_s18 + $0x138] sm:$0xff] }
 0x111   : > { %1776 = vmatprep.mubr.bf16.mxu1 %v5083_v49  ;;  %v404_v43 = vld [vmem:[%s4941_s18 + $0x30] sm:$0xff] }
 0x112   : > { %1820 = vmatpush2.bf16.msra.mxu0 %v4172_v47  ;;  %5949 = vst [vmem:[#allocation21_spill] sm:$0xff] %v5139_v59 }
 0x113   : > { %3926 = vmatpush2.bf16.msra.mxu1 %v4172_v47  ;;  %1821 = vmatprep.subr.bf16.mxu0 %v4177_v58  ;;  %v417_v47 = vld [vmem:[%s4941_s18 + $0x98] sm:$0xff] }
 0x114   : > { %3911 = vmatprep.subr.bf16.mxu1 %v4177_v58  ;;  %v5137_v58 = vpack.c.bf16 %v409_v39, %v402_v38  ;;  %v5141_v61 = vpack.c.bf16 %v424_v50, %v417_v47  ;;  %v4200_v38 = vld [vmem:[#allocation5 + $0x128] ss:$12 sps:$4 sm:$0xff]   ;;  %v430_v39 = vld [vmem:[%s4941_s18 + $0x100] sm:$0xff]  ;;  %v445_v47 = vld [vmem:[%s4941_s18 + $0x178] sm:$0xff] }
 0x115   : > { %1664 = vmatmul.mubr.bf16.gmra.mxu0 %v5096_v0  ;;  %v452_v50 = vld [vmem:[%s4941_s18 + $0x1b0] sm:$0xff] }
 0x116   : > { %1777 = vmatmul.mubr.bf16.gmra.mxu1 %v5098_v1  ;;  %1822 = vmatpush2.bf16.msra.mxu0 %v4175_v3 }
 0x117   : > { %3927 = vmatpush2.bf16.msra.mxu1 %v4175_v3  ;;  %1823 = vmatprep.subr.bf16.mxu0 %v4180_v4  ;;  %v5143_v3 = vpack.c.bf16 %v508_v57, %v501_v51  ;;  %v4202_v51 = vld [vmem:[#allocation5 + $0x68] ss:$12 sps:$4 sm:$0xff]   ;;  %v4204_v57 = vld [vmem:[#allocation5 + $0x110] ss:$12 sps:$4 sm:$0xff]  }
 0x118   : > { %3912 = vmatprep.subr.bf16.mxu1 %v4180_v4  ;;  %1673 = vmatprep.mubr.bf16.mxu0 %v5101_v8  ;;  %v4192_v4 = vld [vmem:[#allocation5 + $0x158] ss:$12 sps:$4 sm:$0xff]  }
 0x119   : > { %1786 = vmatprep.mubr.bf16.mxu1 %v5103_v9  ;;  %5950 = vst [vmem:[#allocation22_spill] sm:$0xff] %v5143_v3 }
 0x11a   : > { %1824 = vmatpush2.bf16.msra.mxu0 %v4178_v7 }
 0x11b   : > { %3928 = vmatpush2.bf16.msra.mxu1 %v4178_v7  ;;  %1825 = vmatprep.subr.bf16.mxu0 %v4183_v18  ;;  %v416_v7 = vld [vmem:[%s4941_s18 + $0x90] sm:$0xff] }
 0x11c   : > { %3913 = vmatprep.subr.bf16.mxu1 %v4183_v18  ;;  %v431_v18 = vld [vmem:[%s4941_s18 + $0x108] sm:$0xff]  ;;  %v5155_v30 = vpack.c.bf16 %v423_v10, %v416_v7  ;;  %v4206_v7 = vld [vmem:[#allocation5 + $0x50] ss:$12 sps:$4 sm:$0xff]   ;;  %v5175_v10 = vpack.c.bf16 %v452_v50, %v445_v47 }
 0x11d   : > { %1674 = vmatmul.mubr.bf16.gmra.mxu0 %v5116_v24  ;;  %v4203_v50 = vld [vmem:[#allocation5 + $0x200] ss:$12 sps:$4 sm:$0xff]  }
 0x11e   : > { %1787 = vmatmul.mubr.bf16.gmra.mxu1 %v5118_v27  ;;  %1826 = vmatpush2.bf16.msra.mxu0 %v4181_v31 }
 0x11f   : > { %3929 = vmatpush2.bf16.msra.mxu1 %v4181_v31  ;;  %1827 = vmatprep.subr.bf16.mxu0 %v4186_v32  ;;  %v5157_v31 = vpack.c.bf16 %v507_v12, %v500_v11  ;;  %v4197_v11 = vld [vmem:[#allocation5 + $0x2d8] ss:$12 sps:$4 sm:$0xff]  }
 0x120   : > { %3914 = vmatprep.subr.bf16.mxu1 %v4186_v32  ;;  %1829 = vmatprep.mubr.bf16.mxu0 %v5121_v34  ;;  %v4198_v32 = vld [vmem:[#allocation5 + $0x80] ss:$12 sps:$4 sm:$0xff]   ;;  %v4208_v12 = vld [vmem:[#allocation5 + $0xf8] ss:$12 sps:$4 sm:$0xff]  }
 0x121   : > { %1889 = vmatprep.mubr.bf16.mxu1 %v5123_v37  ;;  %5951 = vst [vmem:[#allocation23_spill] sm:$0xff] %v5157_v31 }
 0x122   : > { %1828 = vmatpush2.bf16.msra.mxu0 %v4184_v33 }
 0x123   : > { %3930 = vmatpush2.bf16.msra.mxu1 %v4184_v33  ;;  %3584 = vmatprep.subr.bf16.mxu0 %v4190_v56  ;;  %v5159_v33 = vpack.c.bf16 %v438_v19, %v431_v18  ;;  %v5925_v56 = vmov 0   ;;  %v451_v18 = vld [vmem:[%s4941_s18 + $0x1a8] sm:$0xff]  ;;  %v418_v19 = vld [vmem:[%s4941_s18 + $0xa0] sm:$0xff] }
 0x124   : > { %1924 = vmatprep.subr.bf16.mxu1 %v4189_v44  ;;  %v411_v44 = vld [vmem:[%s4941_s18 + $0x68] sm:$0xff] }
 0x125   : > { %1830 = vmatmul.mubr.bf16.vlgmr.msra.gmra.mxu0 %v5137_v58 }
 0x126   : > { %1890 = vmatmul.mubr.bf16.vlgmr.msra.gmra.mxu1 %v5139_v59  ;;  %1839 = vmatprep.mubr.bf16.mxu0 %v5141_v61  ;;  %v432_v59 = vld [vmem:[%s4941_s18 + $0x110] sm:$0xff] }
 0x127   : > { %1925 = vmatpush1.bf16.msra.mxu1 %v4187_v60  ;;  %1899 = vmatprep.mubr.bf16.mxu1 %v5143_v3  ;;  %v5171_v60 = vpack.c.bf16 %v437_v42, %v430_v39  ;;  %v4210_v39 = vld [vmem:[#allocation5 + $0x38] ss:$12 sps:$4 sm:$0xff]   ;;  %v4201_v42 = vld [vmem:[#allocation5 + $0x2c0] ss:$12 sps:$4 sm:$0xff]  }
 0x128   : > { %3585 = vmatpush3.bf16.msra.mxu0 %v4191_v2  ;;  %3648 = vmatprep.subr.bf16.mxu1 %v4193_v15  ;;  %v5173_v2 = vpack.c.bf16 %v411_v44, %v404_v43  ;;  %v444_v15 = vld [vmem:[%s4941_s18 + $0x170] sm:$0xff]  ;;  %v4212_v43 = vld [vmem:[#allocation5 + $0xe0] ss:$12 sps:$4 sm:$0xff]  }
 0x129   : > { %3586 = vmatprep.subr.bf16.mxu0 %v4192_v4  ;;  %v4195_v4 = vld [vmem:[#allocation5 + $0x230] ss:$12 sps:$4 sm:$0xff]   ;;  %v5188_v44 = vpack.c.bf16 %v451_v18, %v444_v15  ;;  %v458_v3 = vld [vmem:[%s4941_s18 + $0x1e0] sm:$0xff]  ;;  %v5952_v15 = vmov 0   ;;  %v4207_v18 = vld [vmem:[#allocation5 + $0x1e8] ss:$12 sps:$4 sm:$0xff]  }
 0x12c   : > { %3587 = vmatpush3.bf16.msra.mxu0 %v4194_v22  ;;  %v425_v22 = vld [vmem:[%s4941_s18 + $0xd8] sm:$0xff] }
 0x12d   : > { %3588 = vmatprep.subr.bf16.mxu0 %v4196_v23  ;;  %1840 = vmatmul.mubr.bf16.gmra.mxu0 %v5155_v30  ;;  %v459_v23 = vld [vmem:[%s4941_s18 + $0x1e8] sm:$0xff]  ;;  %v5190_v47 = vpack.c.bf16 %v425_v22, %v418_v19  ;;  %v4209_v22 = vld [vmem:[#allocation5 + $0x290] ss:$12 sps:$4 sm:$0xff]  }
 0x12e   : > { %1900 = vmatmul.mubr.bf16.gmra.mxu1 %v5157_v31  ;;  %1849 = vmatprep.mubr.bf16.mxu0 %v5159_v33  ;;  %v4216_v31 = vld [vmem:[#allocation5 + $0xc8] ss:$12 sps:$4 sm:$0xff]  }
 0x12f   : > { %1942 = vmatprep.mubr.bf16.mxu1 %v5925_v56  ;;  %v4218_v19 = vld [vmem:[#allocation5 + $0x8] ss:$12 sps:$4 sm:$0xff]  }
 0x130   : > { %3589 = vmatpush3.bf16.msra.mxu0 %v4198_v32  ;;  %v466_v32 = vld [vmem:[%s4941_s18 + $0x220] sm:$0xff] }
 0x131   : > { %3590 = vmatprep.subr.bf16.mxu0 %v4200_v38  ;;  %v4199_v38 = vld [vmem:[#allocation5 + $0x218] ss:$12 sps:$4 sm:$0xff]  }
 0x134   : > { %3591 = vmatpush3.bf16.msra.mxu0 %v4202_v51  ;;  %v5192_v51 = vpack.c.bf16 %v466_v32, %v459_v23  ;;  %v4222_v23 = vld [vmem:[#allocation5 + $0x470] ss:$12 sps:$4 sm:$0xff]  }
 0x135   : > { %3592 = vmatprep.subr.bf16.mxu0 %v4204_v57  ;;  %1850 = vmatmul.mubr.bf16.gmra.mxu0 %v5171_v60  ;;  %v4205_v57 = vld [vmem:[#allocation5 + $0x2a8] ss:$12 sps:$4 sm:$0xff]  }
 0x136   : > { %3507 = vmatmul.mubr.msk.bf16.vlgmr.msra.gmra.mxu1 %vm1546_vm0, %v5173_v2  ;;  %1859 = vmatprep.mubr.bf16.mxu0 %v5175_v10 }
 0x137   : > { %1952 = vmatprep.mubr.bf16.mxu1 %v5925_v56  ;;  %3649 = vmatpush3.bf16.msra.mxu1 %v4195_v4  ;;  %v4214_v56 = vld [vmem:[#allocation5 + $0x20] ss:$12 sps:$4 sm:$0xff]   ;;  %v465_v4 = vld [vmem:[%s4941_s18 + $0x218] sm:$0xff] }
 0x138   : > { %3593 = vmatpush3.bf16.msra.mxu0 %v4206_v7  ;;  %3650 = vmatprep.subr.bf16.mxu1 %v4197_v11  ;;  %v439_v7 = vld [vmem:[%s4941_s18 + $0x148] sm:$0xff]  ;;  %v473_v11 = vld [vmem:[%s4941_s18 + $0x258] sm:$0xff]  ;;  %v5205_v32 = vpack.c.bf16 %v465_v4, %v458_v3  ;;  %v446_v3 = vld [vmem:[%s4941_s18 + $0x180] sm:$0xff] }
 0x139   : > { %3594 = vmatprep.subr.bf16.mxu0 %v4208_v12  ;;  %v480_v12 = vld [vmem:[%s4941_s18 + $0x290] sm:$0xff] }
 0x13b   : > { %3651 = vmatpush3.bf16.msra.mxu1 %v4199_v38  ;;  %v5207_v38 = vpack.c.bf16 %v439_v7, %v432_v59  ;;  %v479_v59 = vld [vmem:[%s4941_s18 + $0x288] sm:$0xff] }
 0x13c   : > { %3595 = vmatpush3.bf16.msra.mxu0 %v4210_v39  ;;  %3652 = vmatprep.subr.bf16.mxu1 %v4201_v42  ;;  %v5209_v39 = vpack.c.bf16 %v480_v12, %v473_v11  ;;  %v4211_v42 = vld [vmem:[#allocation5 + $0x1d0] ss:$12 sps:$4 sm:$0xff]   ;;  %v4219_v11 = vld [vmem:[#allocation5 + $0x1a0] ss:$12 sps:$4 sm:$0xff]   ;;  %v4220_v12 = vld [vmem:[#allocation5 + $0x248] ss:$12 sps:$4 sm:$0xff]  }
 0x13d   : > { %3596 = vmatprep.subr.bf16.mxu0 %v4212_v43  ;;  %1860 = vmatmul.mubr.bf16.gmra.mxu0 %v5188_v44  ;;  %v453_v43 = vld [vmem:[%s4941_s18 + $0x1b8] sm:$0xff] }
 0x13e   : > { %3508 = vmatmul.mubr.msk.bf16.gmra.mxu1 %vm1546_vm0, %v5190_v47  ;;  %1869 = vmatprep.mubr.bf16.mxu0 %v5192_v51  ;;  %v5222_v7 = vpack.c.bf16 %v453_v43, %v446_v3  ;;  %v4226_v3 = vld [vmem:[#allocation5 + $0x440] ss:$12 sps:$4 sm:$0xff]  }
 0x13f   : > { %1962 = vmatprep.mubr.bf16.mxu1 %v5952_v15  ;;  %3653 = vmatpush3.bf16.msra.mxu1 %v4203_v50  ;;  %v4215_v50 = vld [vmem:[#allocation5 + $0x1b8] ss:$12 sps:$4 sm:$0xff]  }
 0x140   : > { %3597 = vmatpush3.bf16.msra.mxu0 %v4214_v56  ;;  %3654 = vmatprep.subr.bf16.mxu1 %v4205_v57  ;;  %v4213_v56 = vld [vmem:[#allocation5 + $0x278] ss:$12 sps:$4 sm:$0xff]   ;;  %v4217_v57 = vld [vmem:[#allocation5 + $0x260] ss:$12 sps:$4 sm:$0xff]  }
 0x141   : > { %3598 = vmatprep.subr.bf16.mxu0 %v4216_v31  ;;  %v472_v31 = vld [vmem:[%s4941_s18 + $0x250] sm:$0xff] }
 0x142   : > { %v5220_v4 = vpack.c.bf16 %v479_v59, %v472_v31  ;;  %v474_v31 = vld [vmem:[%s4941_s18 + $0x260] sm:$0xff]  ;;  %v481_v59 = vld [vmem:[%s4941_s18 + $0x298] sm:$0xff] }
 0x143   : > { %3655 = vmatpush3.bf16.msra.mxu1 %v4207_v18  ;;  %v460_v18 = vld [vmem:[%s4941_s18 + $0x1f0] sm:$0xff]  ;;  %v5240_v43 = vpack.c.bf16 %v481_v59, %v474_v31  ;;  %v4234_v31 = vld [vmem:[#allocation5 + $0x3e0] ss:$12 sps:$4 sm:$0xff]  }
 0x144   : > { %3599 = vmatpush3.bf16.msra.mxu0 %v4218_v19  ;;  %3656 = vmatprep.subr.bf16.mxu1 %v4209_v22  ;;  %v467_v19 = vld [vmem:[%s4941_s18 + $0x228] sm:$0xff] }
 0x145   : > { %3712 = vmatprep.subr.bf16.mxu0 %v4222_v23  ;;  %1870 = vmatmul.mubr.bf16.gmra.mxu0 %v5205_v32  ;;  %v4221_v22 = vld [vmem:[#allocation5 + $0x188] ss:$12 sps:$4 sm:$0xff]   ;;  %v5231_v23 = vpack.c.bf16 %v467_v19, %v460_v18  ;;  %v4230_v18 = vld [vmem:[#allocation5 + $0x410] ss:$12 sps:$4 sm:$0xff]  }
 0x146   : > { %3509 = vmatmul.mubr.msk.bf16.gmra.mxu1 %vm1546_vm0, %v5207_v38  ;;  %1879 = vmatprep.mubr.bf16.mxu0 %v5209_v39 }
 0x147   : > { %1972 = vmatprep.mubr.bf16.mxu1 %v5952_v15  ;;  %3657 = vmatpush3.bf16.msra.mxu1 %v4211_v42  ;;  %v4223_v42 = vld [vmem:[#allocation5 + $0x3b0] ss:$12 sps:$4 sm:$0xff]  }
 0x148   : > { %3658 = vmatprep.subr.bf16.mxu1 %v4213_v56  ;;  %v4224_v56 = vld [vmem:[#allocation5 + $0x458] ss:$12 sps:$4 sm:$0xff]  }
 0x14b   : > { %3659 = vmatpush3.bf16.msra.mxu1 %v4215_v50  ;;  %v4238_v50 = vld [vmem:[#allocation5 + $0x488] ss:$12 sps:$4 sm:$0xff]  }
 0x14c   : > { %3660 = vmatprep.subr.bf16.mxu1 %v4217_v57  ;;  %v4227_v57 = vld [vmem:[#allocation5 + $0x380] ss:$12 sps:$4 sm:$0xff]  }
 0x14d   : > { %1880 = vmatmul.mubr.bf16.gmra.mxu0 %v5220_v4 }
 0x14e   : > { %3510 = vmatmul.mubr.msk.bf16.gmra.mxu1 %vm1546_vm0, %v5222_v7  ;;  %2055 = vmatprep.mubr.bf16.mxu0 %v4963_v53  ;;  %v4225_v53 = vld [vmem:[#allocation5 + $0x398] ss:$12 sps:$4 sm:$0xff]  }
 0x14f   : > { %1982 = vmatprep.mubr.bf16.mxu1 %v5952_v15  ;;  %3661 = vmatpush3.bf16.msra.mxu1 %v4219_v11  ;;  %v4228_v11 = vld [vmem:[#allocation5 + $0x428] ss:$12 sps:$4 sm:$0xff]  }
 0x150   : > { %3662 = vmatprep.subr.bf16.mxu1 %v4220_v12  ;;  %v4229_v12 = vld [vmem:[#allocation5 + $0x368] ss:$12 sps:$4 sm:$0xff]  }
 0x153   : > { %3663 = vmatpush3.bf16.msra.mxu1 %v4221_v22  ;;  %v4231_v22 = vld [vmem:[#allocation5 + $0x350] ss:$12 sps:$4 sm:$0xff]  }
 0x154   : > { %3817 = vmatprep.subr.bf16.mxu1 %v4238_v50 }
 0x155   : > { %2056 = vmatmul.mubr.bf16.vlgmr.msra.gmra.mxu0 %v4975_v13  ;;  %v488_v13 = vld [vmem:[%s4941_s18 + $0x2d0] sm:$0xff] }
 0x156   : > { %3511 = vmatmul.mubr.msk.bf16.gmra.mxu1 %vm1546_vm0, %v5231_v23  ;;  %2063 = vmatprep.mubr.bf16.mxu0 %v4981_v20  ;;  %v495_v20 = vld [vmem:[%s4941_s18 + $0x308] sm:$0xff] }
 0x157   : > { %1992 = vmatprep.mubr.bf16.mxu1 %v5952_v15  ;;  %3713 = vmatpush3.bf16.msra.mxu0 %v4223_v42  ;;  %v5249_v19 = vpack.c.bf16 %v495_v20, %v488_v13  ;;  %v4232_v42 = vld [vmem:[#allocation5 + $0x3f8] ss:$12 sps:$4 sm:$0xff]  }
 0x158   : > { %3714 = vmatprep.subr.bf16.mxu0 %v4224_v56  ;;  %v509_v56 = vld [vmem:[%s4941_s18 + $0x378] sm:$0xff] }
 0x15b   : > { %3715 = vmatpush3.bf16.msra.mxu0 %v4225_v53  ;;  %v4235_v53 = vld [vmem:[#allocation5 + $0x320] ss:$12 sps:$4 sm:$0xff]  }
 0x15c   : > { %3716 = vmatprep.subr.bf16.mxu0 %v4226_v3  ;;  %v4236_v3 = vld [vmem:[#allocation5 + $0x3c8] ss:$12 sps:$4 sm:$0xff]  }
 0x15d   : > { %2064 = vmatmul.mubr.bf16.gmra.mxu0 %v4994_v28  ;;  %v502_v28 = vld [vmem:[%s4941_s18 + $0x340] sm:$0xff] }
 0x15e   : > { %3512 = vmatmul.mubr.msk.bf16.gmra.mxu1 %vm1546_vm0, %v5240_v43  ;;  %2071 = vmatprep.mubr.bf16.mxu0 %v5001_v35  ;;  %v4233_v35 = vld [vmem:[#allocation5 + $0x338] ss:$12 sps:$4 sm:$0xff]   ;;  %v5258_v59 = vpack.c.bf16 %v509_v56, %v502_v28 }
 0x15f   : > { %2002 = vmatprep.mubr.bf16.mxu1 %v5952_v15  ;;  %3717 = vmatpush3.bf16.msra.mxu0 %v4227_v57  ;;  %v4243_v57 = vld [vmem:[#allocation7 + $0x18] sm:$0xff]  }
 0x160   : > { %3718 = vmatprep.subr.bf16.mxu0 %v4228_v11 }
 0x163   : > { %3719 = vmatpush3.bf16.msra.mxu0 %v4229_v12  ;;  %v5953_v12 = vld [vmem:[#allocation21_spill] sm:$0xff] }
 0x164   : > { %3720 = vmatprep.subr.bf16.mxu0 %v4230_v18 }
 0x165   : > { %2072 = vmatmul.mubr.bf16.gmra.mxu0 %v5015_v45  ;;  %v4237_v45 = vld [vmem:[#allocation5 + $0x308] ss:$12 sps:$4 sm:$0xff]  }
 0x166   : > { %3513 = vmatmul.mubr.msk.bf16.gmra.mxu1 %vm1546_vm0, %v5249_v19  ;;  %2079 = vmatprep.mubr.bf16.mxu0 %v5021_v52 }
 0x167   : > { %2012 = vmatprep.mubr.bf16.mxu1 %v5952_v15  ;;  %3721 = vmatpush3.bf16.msra.mxu0 %v4231_v22  ;;  %v5954_v22 = vld [vmem:[#allocation22_spill] sm:$0xff] }
 0x168   : > { %3722 = vmatprep.subr.bf16.mxu0 %v4232_v42 }
 0x16b   : > { %3723 = vmatpush3.bf16.msra.mxu0 %v4233_v35  ;;  %v4245_v35 = vld [vmem:[#allocation7 + $0x8] sm:$0xff]  }
 0x16c   : > { %3724 = vmatprep.subr.bf16.mxu0 %v4234_v31 }
 0x16d   : > { %2080 = vmatmul.mubr.bf16.gmra.mxu0 %v5034_v62 }
 0x16e   : > { %3514 = vmatmul.mubr.msk.bf16.gmra.mxu1 %vm1546_vm0, %v5258_v59  ;;  %2087 = vmatprep.mubr.bf16.mxu0 %v5041_v5 }
 0x16f   : > { %2152 = vmatprep.mubr.bf16.mxu1 %v4965_v54  ;;  %3725 = vmatpush3.bf16.msra.mxu0 %v4235_v53  ;;  %v4239_v54 = vld [vmem:[#allocation7 + $0x38] sm:$0xff]  }
 0x170   : > { %3726 = vmatprep.subr.bf16.mxu0 %v4236_v3 }
 0x173   : > { %3727 = vmatpush3.bf16.msra.mxu0 %v4237_v45 }
 0x175   : > { %2088 = vmatmul.mubr.bf16.gmra.mxu0 %v5054_v16 }
 0x176   : > { %2153 = vmatmul.mubr.bf16.vlgmr.msra.gmra.mxu1 %v4977_v14  ;;  %2095 = vmatprep.mubr.bf16.mxu0 %v5061_v25 }
 0x177   : > { %2160 = vmatprep.mubr.bf16.mxu1 %v4983_v21  ;;  %3818 = vmatpush3.bf16.msra.mxu1 %v4238_v50 }
 0x178   : > { %3835 = vmatprep.subr.bf16.mxu1 %v4239_v54 }
 0x17d   : > { %2096 = vmatmul.mubr.bf16.gmra.mxu0 %v5076_v40 }
 0x17e   : > { %2161 = vmatmul.mubr.bf16.gmra.mxu1 %v4996_v29  ;;  %2103 = vmatprep.mubr.bf16.mxu0 %v5081_v48 }
 0x17f   : > { %2168 = vmatprep.mubr.bf16.mxu1 %v5003_v36 }
 0x185   : > { %2104 = vmatmul.mubr.bf16.gmra.mxu0 %v5096_v0 }
 0x186   : > { %2169 = vmatmul.mubr.bf16.gmra.mxu1 %v5017_v46  ;;  %2111 = vmatprep.mubr.bf16.mxu0 %v5101_v8 }
 0x187   : > { %2176 = vmatprep.mubr.bf16.mxu1 %v5023_v55 }
 0x18d   : > { %2112 = vmatmul.mubr.bf16.gmra.mxu0 %v5116_v24 }
 0x18e   : > { %2177 = vmatmul.mubr.bf16.gmra.mxu1 %v5036_v63  ;;  %2249 = vmatprep.mubr.bf16.mxu0 %v5121_v34 }
 0x18f   : > { %2184 = vmatprep.mubr.bf16.mxu1 %v5043_v6 }
 0x195   : > { %2250 = vmatmul.mubr.bf16.vlgmr.msra.gmra.mxu0 %v5137_v58 }
 0x196   : > { %2185 = vmatmul.mubr.bf16.gmra.mxu1 %v5056_v17  ;;  %2257 = vmatprep.mubr.bf16.mxu0 %v5141_v61 }
 0x197   : > { %2192 = vmatprep.mubr.bf16.mxu1 %v5063_v26 }
 0x19d   : > { %2258 = vmatmul.mubr.bf16.gmra.mxu0 %v5155_v30 }
 0x19e   : > { %2193 = vmatmul.mubr.bf16.gmra.mxu1 %v5078_v41  ;;  %2265 = vmatprep.mubr.bf16.mxu0 %v5159_v33  ;;  %v4241_v33 = vld [vmem:[#allocation7 + $0x28] sm:$0xff]  }
 0x19f   : > { %2200 = vmatprep.mubr.bf16.mxu1 %v5083_v49 }
 0x1a5   : > { %v1605_v14 = vpop.f32.mrf.mxu0  ;;  %2266 = vmatmul.mubr.bf16.gmra.mxu0 %v5171_v60 }
 0x1a6   : > { %v1718_v21 = vpop.f32.mrf.mxu1  ;;  %2201 = vmatmul.mubr.bf16.gmra.mxu1 %v5098_v1  ;;  %2273 = vmatprep.mubr.bf16.mxu0 %v5175_v10 }
 0x1a7   : > { %v5291_v29 = vadd.f32 %v1718_v21, %v1605_v14  ;;  %2208 = vmatprep.mubr.bf16.mxu1 %v5103_v9  ;;  %v1607_v36 = vpop.f32.mrf.mxu0  ;;  %v4240_v9 = vld [vmem:[#allocation7 + $0x30] sm:$0xff]  }
 0x1a8   : > { %v1720_v46 = vpop.f32.mrf.mxu1  ;;  %v5955_v14 = vld [vmem:[#allocation23_spill] sm:$0xff] }
 0x1a9   : > { %v5295_v52 = vadd.f32 %v1720_v46, %v1607_v36  ;;  %v5297_v55 = vpop.f32.mrf.mxu0 }
 0x1aa   : > { %v5299_v62 = vpop.f32.mrf.mxu1 }
 0x1ab   : > { %v1611_v63 = vpop.f32.mrf.mxu0 }
 0x1ac   : > { %v1724_v5 = vpop.f32.mrf.mxu1 }
 0x1ad   : > { %v5301_v6 = vadd.f32 %v1724_v5, %v1611_v63  ;;  %v1615_v16 = vpop.f32.mrf.mxu0  ;;  %2274 = vmatmul.mubr.bf16.gmra.mxu0 %v5188_v44 }
 0x1ae   : > { %v1728_v17 = vpop.f32.mrf.mxu1  ;;  %2209 = vmatmul.mubr.bf16.gmra.mxu1 %v5118_v27  ;;  %2281 = vmatprep.mubr.bf16.mxu0 %v5192_v51 }
 0x1af   : > { %v5305_v25 = vadd.f32 %v1728_v17, %v1615_v16  ;;  %3819 = vmatprep.mubr.msk.bf16.mxu1 %vm1546_vm0, %v5173_v2  ;;  %v1617_v26 = vpop.f32.mrf.mxu0 }
 0x1b0   : > { %v1730_v40 = vpop.f32.mrf.mxu1 }
 0x1b1   : > { %v5310_v41 = vadd.f32 %v1730_v40, %v1617_v26  ;;  %v5312_v48 = vpop.f32.mrf.mxu0 }
 0x1b2   : > { %v5314_v49 = vpop.f32.mrf.mxu1 }
 0x1b3   : > { %v1621_v0 = vpop.f32.mrf.mxu0 }
 0x1b4   : > { %v1734_v1 = vpop.f32.mrf.mxu1 }
 0x1b5   : > { %v5316_v8 = vadd.f32 %v1734_v1, %v1621_v0  ;;  %v1625_v24 = vpop.f32.mrf.mxu0  ;;  %2282 = vmatmul.mubr.bf16.gmra.mxu0 %v5205_v32 }
 0x1b6   : > { %v1738_v27 = vpop.f32.mrf.mxu1  ;;  %3820 = vmatmul.mubr.msk.bf16.vlgmr.msra.gmra.mxu1 %vm1546_vm0, %v5190_v47  ;;  %2289 = vmatprep.mubr.bf16.mxu0 %v5209_v39  ;;  %v4242_v47 = vld [vmem:[#allocation7 + $0x20] sm:$0xff]  }
 0x1b7   : > { %v5321_v34 = vadd.f32 %v1738_v27, %v1625_v24  ;;  %3823 = vmatprep.mubr.msk.bf16.mxu1 %vm1546_vm0, %v5207_v38  ;;  %v1627_v58 = vpop.f32.mrf.mxu0  ;;  %3836 = vmatpush3.bf16.msra.mxu1 %v4239_v54 }
 0x1b8   : > { %v1740_v61 = vpop.f32.mrf.mxu1  ;;  %3837 = vmatprep.subr.bf16.mxu1 %v4240_v9 }
 0x1b9   : > { %v5326_v30 = vadd.f32 %v1740_v61, %v1627_v58  ;;  %v5328_v60 = vpop.f32.mrf.mxu0 }
 0x1ba   : > { %v5330_v2 = vpop.f32.mrf.mxu1 }
 0x1bb   : > { %v5332_v10 = vpop.f32.mrf.mxu0  ;;  %3838 = vmatpush3.bf16.msra.mxu1 %v4240_v9 }
 0x1bc   : > { %v5334_v44 = vpop.f32.mrf.mxu1  ;;  %3839 = vmatprep.subr.bf16.mxu1 %v4241_v33 }
 0x1bd   : > { %v1635_v51 = vpop.f32.mrf.mxu0  ;;  %2290 = vmatmul.mubr.bf16.gmra.mxu0 %v5220_v4 }
 0x1be   : > { %v1748_v15 = vpop.f32.mrf.mxu1  ;;  %3824 = vmatmul.mubr.msk.bf16.gmra.mxu1 %vm1546_vm0, %v5222_v7  ;;  %2297 = vmatprep.mubr.bf16.mxu0 %v5123_v37 }
 0x1bf   : > { %v5339_v32 = vadd.f32 %v1748_v15, %v1635_v51  ;;  %3827 = vmatprep.mubr.msk.bf16.mxu1 %vm1546_vm0, %v5231_v23  ;;  %v1637_v38 = vpop.f32.mrf.mxu0  ;;  %3840 = vmatpush3.bf16.msra.mxu1 %v4241_v33  ;;  %v4244_v23 = vld [vmem:[#allocation7 + $0x10] sm:$0xff]  }
 0x1c0   : > { %v1750_v39 = vpop.f32.mrf.mxu1  ;;  %3841 = vmatprep.subr.bf16.mxu1 %v4242_v47 }
 0x1c1   : > { %v5344_v50 = vadd.f32 %v1750_v39, %v1637_v38  ;;  %v5346_v11 = vpop.f32.mrf.mxu0 }
 0x1c2   : > { %v5348_v13 = vpop.f32.mrf.mxu1 }
 0x1c3   : > { %v5350_v7 = vpop.f32.mrf.mxu0  ;;  %3842 = vmatpush3.bf16.msra.mxu1 %v4242_v47 }
 0x1c4   : > { %v5352_v4 = vpop.f32.mrf.mxu1  ;;  %3843 = vmatprep.subr.bf16.mxu1 %v4243_v57 }
 0x1c5   : > { %v1645_v20 = vpop.f32.mrf.mxu0  ;;  %2298 = vmatmul.mubr.bf16.gmra.mxu0 %v5953_v12 }
 0x1c6   : > { %v1758_v37 = vpop.f32.mrf.mxu1  ;;  %3828 = vmatmul.mubr.msk.bf16.gmra.mxu1 %vm1546_vm0, %v5240_v43  ;;  %2305 = vmatprep.mubr.bf16.mxu0 %v5954_v22 }
 0x1c7   : > { %v5357_v18 = vadd.f32 %v1758_v37, %v1645_v20  ;;  %3831 = vmatprep.mubr.msk.bf16.mxu1 %vm1546_vm0, %v5249_v19  ;;  %v1647_v42 = vpop.f32.mrf.mxu0  ;;  %3844 = vmatpush3.bf16.msra.mxu1 %v4243_v57  ;;  %v4246_v19 = vld [vmem:[#allocation7] sm:$0xff]  }
 0x1c8   : > { %v1760_v28 = vpop.f32.mrf.mxu1  ;;  %3845 = vmatprep.subr.bf16.mxu1 %v4244_v23 }
 0x1c9   : > { %v5362_v56 = vadd.f32 %v1760_v28, %v1647_v42  ;;  %v5364_v31 = vpop.f32.mrf.mxu0 }
 0x1ca   : > { %v5366_v53 = vpop.f32.mrf.mxu1 }
 0x1cb   : > { %v5368_v43 = vpop.f32.mrf.mxu0  ;;  %3846 = vmatpush3.bf16.msra.mxu1 %v4244_v23 }
 0x1cc   : > { %v5370_v3 = vpop.f32.mrf.mxu1  ;;  %3847 = vmatprep.subr.bf16.mxu1 %v4245_v35 }
 0x1cd   : > { %v1655_v45 = vpop.f32.mrf.mxu0  ;;  %2306 = vmatmul.mubr.bf16.gmra.mxu0 %v5955_v14 }
 0x1ce   : > { %v1768_v54 = vpop.f32.mrf.mxu1  ;;  %3832 = vmatmul.mubr.msk.bf16.gmra.mxu1 %vm1546_vm0, %v5258_v59 }
 0x1cf   : > { %v5375_v21 = vadd.f32 %v1768_v54, %v1655_v45  ;;  %v1657_v36 = vpop.f32.mrf.mxu0  ;;  %3848 = vmatpush3.bf16.msra.mxu1 %v4245_v35 }
 0x1d0   : > { %v1770_v46 = vpop.f32.mrf.mxu1  ;;  %3849 = vmatprep.subr.bf16.mxu1 %v4246_v19 }
 0x1d1   : > { %v5377_v63 = vadd.f32 %v1770_v46, %v1657_v36  ;;  %v5379_v5 = vpop.f32.mrf.mxu0 }
 0x1d2   : > { %v5381_v16 = vpop.f32.mrf.mxu1 }
 0x1d3   : > { %v5383_v17 = vpop.f32.mrf.mxu0  ;;  %3850 = vmatpush3.bf16.msra.mxu1 %v4246_v19 }
 0x1d4   : > { %5956 = vst [vmem:[#allocation21_spill] sm:$0xff] %v5383_v17  ;;  %v5385_v26 = vpop.f32.mrf.mxu1 }
 0x1d5   : > { %5957 = vst [vmem:[#allocation22_spill] sm:$0xff] %v5385_v26  ;;  %v1665_v59 = vpop.f32.mrf.mxu0 }
 0x1d6   : > { %v1778_v40 = vpop.f32.mrf.mxu1 }
 0x1d7   : > { %v1779_v0 = vadd.f32 %v1778_v40, %v1665_v59  ;;  %v1667_v1 = vpop.f32.mrf.mxu0 }
 0x1d8   : > { %v1780_v9 = vpop.f32.mrf.mxu1 }
 0x1d9   : > { %v1781_v24 = vadd.f32 %v1780_v9, %v1667_v1  ;;  %v5387_v27 = vpop.f32.mrf.mxu0 }
 0x1da   : > { %v5389_v58 = vpop.f32.mrf.mxu1 }
 0x1db   : > { %v1671_v61 = vpop.f32.mrf.mxu0 }
 0x1dc   : > { %v1784_v33 = vpop.f32.mrf.mxu1 }
 0x1dd   : > { %v1785_v47 = vadd.f32 %v1784_v33, %v1671_v61  ;;  %v1675_v51 = vpop.f32.mrf.mxu0 }
 0x1de   : > { %v1788_v15 = vpop.f32.mrf.mxu1 }
 0x1df   : > { %v1789_v38 = vadd.f32 %v1788_v15, %v1675_v51  ;;  %v1677_v39 = vpop.f32.mrf.mxu0 }
 0x1e0   : > { %v1790_v57 = vpop.f32.mrf.mxu1 }
 0x1e1   : > { %v1791_v23 = vadd.f32 %v1790_v57, %v1677_v39  ;;  %v5391_v20 = vpop.f32.mrf.mxu0 }
 0x1e2   : > { %v5393_v37 = vpop.f32.mrf.mxu1 }
 0x1e3   : > { %v1681_v12 = vpop.f32.mrf.mxu0 }
 0x1e4   : > { %v1794_v22 = vpop.f32.mrf.mxu1 }
 0x1e5   : > { %v1795_v42 = vadd.f32 %v1794_v22, %v1681_v12  ;;  %v1831_v28 = vpop.f32.mrf.mxu0 }
 0x1e6   : > { %v1891_v35 = vpop.f32.mrf.mxu1 }
 0x1e7   : > { %v5395_v19 = vadd.f32 %v1891_v35, %v1779_v0  ;;  %v1833_v45 = vpop.f32.mrf.mxu0 }
 0x1e8   : > { %v1893_v54 = vpop.f32.mrf.mxu1  ;;  %v1834_v14 = vadd.f32 %v1833_v45, %v5295_v52  ;;  %v1832_v45 = vadd.f32 %v1831_v28, %v5291_v29 }
 0x1e9   : > { %v5398_v36 = vadd.f32 %v1893_v54, %v1781_v24  ;;  %v1835_v46 = vpop.f32.mrf.mxu0 }
 0x1ea   : > { %v5400_v59 = vpop.f32.mrf.mxu1 }
 0x1eb   : > { %v1837_v40 = vpop.f32.mrf.mxu0 }
 0x1ec   : > { %v1897_v1 = vpop.f32.mrf.mxu1  ;;  %v1838_v9 = vadd.f32 %v1837_v40, %v5301_v6  ;;  %v5416_v40 = vld [vmem:[#allocation10] ss:$0 sm:$0xff] }
 0x1ed   : > { %v5403_v61 = vadd.f32 %v1897_v1, %v1785_v47  ;;  %v1841_v33 = vpop.f32.mrf.mxu0 }
 0x1ee   : > { %v1901_v51 = vpop.f32.mrf.mxu1 }
 0x1ef   : > { %v5405_v15 = vadd.f32 %v1901_v51, %v1789_v38  ;;  %v1843_v0 = vpop.f32.mrf.mxu0 }
 0x1f0   : > { %v1903_v39 = vpop.f32.mrf.mxu1  ;;  %v1844_v57 = vadd.f32 %v1843_v0, %v5310_v41  ;;  %v1723_v41 = vadd.f32 %v5299_v62, %v5297_v55 }
 0x1f1   : > { %v5408_v52 = vadd.f32 %v1903_v39, %v1791_v23  ;;  %v1845_v24 = vpop.f32.mrf.mxu0 }
 0x1f2   : > { %v5410_v12 = vpop.f32.mrf.mxu1  ;;  %v1836_v0 = vadd.f32 %v1835_v46, %v1723_v41  ;;  %v1733_v46 = vadd.f32 %v5314_v49, %v5312_v48 }
 0x1f3   : > { %v1847_v22 = vpop.f32.mrf.mxu0 }
 0x1f4   : > { %v1907_v35 = vpop.f32.mrf.mxu1  ;;  %v1848_v6 = vadd.f32 %v1847_v22, %v5316_v8  ;;  %v1846_v41 = vadd.f32 %v1845_v24, %v1733_v46  ;;  %v1745_v46 = vadd.f32 %v5334_v44, %v5332_v10 }
 0x1f5   : > { %v5414_v47 = vadd.f32 %v1907_v35, %v1795_v42  ;;  %v1851_v54 = vpop.f32.mrf.mxu0 }
 0x1f6   : > { %v1944_v38 = vpop.f32.mrf.mxu1  ;;  %v1852_v49 = vadd.f32 %v1851_v54, %v5321_v34 }
 0x1f7   : > { %5958 = vst [vmem:[#allocation23_spill] sm:$0xff] %v5414_v47  ;;  %v1945_v23 = vadd.f32 %v1944_v38, %v1832_v45  ;;  %v1853_v1 = vpop.f32.mrf.mxu0  ;;  %v1842_v47 = vadd.f32 %v1841_v33, %v5305_v25 }
 0x1f8   : > { %v1946_v51 = vpop.f32.mrf.mxu1  ;;  %v1854_v26 = vadd.f32 %v1853_v1, %v5326_v30 }
 0x1f9   : > { %v2418_v39 = vadd.f32 %v5416_v40, %v1945_v23  ;;  %v5422_v29 = vadd.f32 %v1946_v51, %v1834_v14  ;;  %v1855_v8 = vpop.f32.mrf.mxu0 }
 0x1fa   : > { %v1948_v42 = vpop.f32.mrf.mxu1 }
 0x1fb   : > { %v3524_v28 = vmul.f32 -1.442695, %v2418_v39  ;;  %v1949_v22 = vadd.f32 %v1948_v42, %v1836_v0  ;;  %v1857_v35 = vpop.f32.mrf.mxu0 }
 0x1fc   : > { %v1950_v17 = vpop.f32.mrf.mxu1 }
 0x1fd   : > { %4255 = vpow2.f32 %v3524_v28  ;;  %v2419_v55 = vadd.f32 %v5416_v40, %v1949_v22  ;;  %v5426_v62 = vadd.f32 %v1950_v17, %v1838_v9  ;;  %v1861_v45 = vpop.f32.mrf.mxu0  ;;  %v1743_v28 = vadd.f32 %v5330_v2, %v5328_v60 }
 0x1fe   : > { %v1954_v30 = vpop.f32.mrf.mxu1  ;;  %v1858_v2 = vadd.f32 %v1857_v35, %v1745_v46  ;;  %v1862_v10 = vadd.f32 %v1861_v45, %v5339_v32 }
 0x1ff   : > { %v3525_v14 = vmul.f32 -1.442695, %v2419_v55  ;;  %v1955_v38 = vadd.f32 %v1954_v30, %v1842_v47  ;;  %v1863_v23 = vpop.f32.mrf.mxu0  ;;  %v1856_v30 = vadd.f32 %v1855_v8, %v1743_v28 }
 0x200   : > { %v1956_v1 = vpop.f32.mrf.mxu1  ;;  %v1864_v25 = vadd.f32 %v1863_v23, %v5344_v50 }
 0x201   : > { %4257 = vpow2.f32 %v3525_v14  ;;  %v2420_v51 = vadd.f32 %v5416_v40, %v1955_v38  ;;  %v5432_v33 = vadd.f32 %v1956_v1, %v1844_v57  ;;  %v1865_v0 = vpop.f32.mrf.mxu0 }
 0x202   : > { %v1958_v17 = vpop.f32.mrf.mxu1 }
 0x203   : > { %v3526_v9 = vmul.f32 -1.442695, %v2420_v51  ;;  %v1959_v39 = vadd.f32 %v1958_v17, %v1846_v41  ;;  %v1867_v42 = vpop.f32.mrf.mxu0 }
 0x204   : > { %v1960_v48 = vpop.f32.mrf.mxu1 }
 0x205   : > { %4259 = vpow2.f32 %v3526_v9  ;;  %v2421_v24 = vadd.f32 %v5416_v40, %v1959_v39  ;;  %v5436_v47 = vadd.f32 %v1960_v48, %v1848_v6  ;;  %v1871_v22 = vpop.f32.mrf.mxu0 }
 0x206   : > { %v1964_v50 = vpop.f32.mrf.mxu1 }
 0x207   : > { %v3527_v57 = vmul.f32 -1.442695, %v2421_v24  ;;  %v1965_v55 = vadd.f32 %v1964_v50, %v1852_v49  ;;  %v1873_v14 = vpop.f32.mrf.mxu0  ;;  %v1755_v50 = vadd.f32 %v5352_v4, %v5350_v7 }
 0x208   : > { %v1966_v38 = vpop.f32.mrf.mxu1  ;;  %v1874_v54 = vadd.f32 %v1873_v14, %v5362_v56  ;;  %v1753_v56 = vadd.f32 %v5348_v13, %v5346_v11 }
 0x209   : > { %4261 = vpow2.f32 %v3527_v57  ;;  %v2422_v34 = vadd.f32 %v5416_v40, %v1965_v55  ;;  %v5444_v6 = vadd.f32 %v1966_v38, %v1854_v26  ;;  %v1875_v23 = vpop.f32.mrf.mxu0  ;;  %v1868_v38 = vadd.f32 %v1867_v42, %v1755_v50 }
 0x20a   : > { %v4256_v41 = vpop.eup %4255  ;;  %v1968_v60 = vpop.f32.mrf.mxu1  ;;  %v1866_v57 = vadd.f32 %v1865_v0, %v1753_v56 }
 0x20b   : > { %v3528_v1 = vmul.f32 -1.442695, %v2422_v34  ;;  %v1969_v51 = vadd.f32 %v1968_v60, %v1856_v30  ;;  %v2482_v17 = vadd.f32 1.0, %v4256_v41  ;;  %v1877_v9 = vpop.f32.mrf.mxu0  ;;  %v1872_v60 = vadd.f32 %v1871_v22, %v5357_v18 }
 0x20c   : > { %v1970_v39 = vpop.f32.mrf.mxu1 }
 0x20d   : > { %v2423_v44 = vadd.f32 %v5416_v40, %v1969_v51  ;;  %v5448_v8 = vadd.f32 %v1970_v39, %v1858_v2  ;;  %4263 = vpow2.f32 %v3528_v1  ;;  %v1881_v26 = vpop.f32.mrf.mxu0 }
 0x20e   : > { %v4258_v48 = vpop.eup %4257  ;;  %v1974_v49 = vpop.f32.mrf.mxu1  ;;  %4265 = vrcp.f32 %v2482_v17 }
 0x20f   : > { %v2483_v24 = vadd.f32 1.0, %v4258_v48  ;;  %v3529_v35 = vmul.f32 -1.442695, %v2423_v44  ;;  %v1975_v28 = vadd.f32 %v1974_v49, %v1862_v10  ;;  %v1883_v32 = vpop.f32.mrf.mxu0  ;;  %v1765_v44 = vadd.f32 %v5370_v3, %v5368_v43 }
 0x210   : > { %v1976_v45 = vpop.f32.mrf.mxu1  ;;  %v5456_v46 = vadd.f32 %v1883_v32, %v5377_v63  ;;  %v1882_v43 = vadd.f32 %v1881_v26, %v5375_v21 }
 0x211   : > { %4267 = vrcp.f32 %v2483_v24  ;;  %v2424_v55 = vadd.f32 %v5416_v40, %v1975_v28  ;;  %v5458_v11 = vadd.f32 %v1976_v45, %v1864_v25  ;;  %v1885_v30 = vpop.f32.mrf.mxu0  ;;  %v1763_v25 = vadd.f32 %v5366_v53, %v5364_v31 }
 0x212   : > { %v4260_v13 = vpop.eup %4259  ;;  %4269 = vpow2.f32 %v3529_v35  ;;  %v1978_v14 = vpop.f32.mrf.mxu1  ;;  %v1878_v28 = vadd.f32 %v1877_v9, %v1765_v44 }
 0x213   : > { %v3530_v34 = vmul.f32 -1.442695, %v2424_v55  ;;  %v1979_v41 = vadd.f32 %v1978_v14, %v1866_v57  ;;  %v2484_v7 = vadd.f32 1.0, %v4260_v13  ;;  %v5460_v4 = vpop.f32.mrf.mxu0  ;;  %v1876_v48 = vadd.f32 %v1875_v23, %v1763_v25 }
 0x214   : > { %v1980_v0 = vpop.f32.mrf.mxu1 }
 0x215   : > { %v2425_v2 = vadd.f32 %v5416_v40, %v1979_v41  ;;  %v5464_v1 = vadd.f32 %v1980_v0, %v1868_v38  ;;  %4271 = vpow2.f32 %v3530_v34  ;;  %v3600_v17 = vpop.f32.mrf.mxu0  ;;  %v1773_v38 = vadd.f32 %v5381_v16, %v5379_v5 }
 0x216   : > { %v4262_v63 = vpop.eup %4261  ;;  %v1984_v51 = vpop.f32.mrf.mxu1  ;;  %4273 = vrcp.f32 %v2484_v7 }
 0x217   : > { %v2485_v42 = vadd.f32 1.0, %v4262_v63  ;;  %v3531_v39 = vmul.f32 -1.442695, %v2425_v2  ;;  %v1985_v10 = vadd.f32 %v1984_v51, %v1872_v60  ;;  %v3601_v22 = vpop.f32.mrf.mxu0  ;;  %v1886_v60 = vadd.f32 %v1885_v30, %v1773_v38 }
 0x218   : > { %v1986_v18 = vpop.f32.mrf.mxu1  ;;  %v5473_v24 = vadd.f32 %v3601_v22, %v3600_v17 }
 0x219   : > { %4275 = vrcp.f32 %v2485_v42  ;;  %v2426_v56 = vadd.f32 %v5416_v40, %v1985_v10  ;;  %v5471_v49 = vadd.f32 %v1986_v18, %v1874_v54  ;;  %v3603_v53 = vpop.f32.mrf.mxu0 }
 0x21a   : > { %4277 = vpow2.f32 %v3531_v39  ;;  %v1988_v31 = vpop.f32.mrf.mxu1  ;;  %v4264_v35 = vpop.eup %4263 }
 0x21b   : > { %v3532_v50 = vmul.f32 -1.442695, %v2426_v56  ;;  %v1989_v57 = vadd.f32 %v1988_v31, %v1876_v48  ;;  %v2486_v32 = vadd.f32 1.0, %v4264_v35  ;;  %v3604_v23 = vpop.f32.mrf.mxu0  ;;  %v4266_v45 = vpop.eup %4265  ;;  %v1783_v31 = vadd.f32 %v5389_v58, %v5387_v27 }
 0x21c   : > { %v1990_v3 = vpop.f32.mrf.mxu1  ;;  %v5479_v13 = vadd.f32 %v3604_v23, %v3603_v53 }
 0x21d   : > { %4279 = vpow2.f32 %v3532_v50  ;;  %v2427_v55 = vadd.f32 %v5416_v40, %v1989_v57  ;;  %v5477_v54 = vadd.f32 %v1990_v3, %v1878_v28  ;;  %v3606_v34 = vpop.f32.mrf.mxu0 }
 0x21e   : > { %v4268_v14 = vpop.eup %4267  ;;  %v1994_v9 = vpop.f32.mrf.mxu1  ;;  %4281 = vrcp.f32 %v2486_v32 }
 0x21f   : > { %v4270_v41 = vpop.eup %4269  ;;  %v3533_v7 = vmul.f32 -1.442695, %v2427_v55  ;;  %v1995_v0 = vadd.f32 %v1994_v9, %v1882_v43  ;;  %v2530_v21 = vpack.c.bf16 %v4268_v14, %v4266_v45  ;;  %v3607_v63 = vpop.f32.mrf.mxu0  ;;  %v1896_v43 = vadd.f32 %v5400_v59, %v1783_v31 }
 0x220   : > { %v2487_v26 = vadd.f32 1.0, %v4270_v41  ;;  %v1996_v2 = vpop.f32.mrf.mxu1  ;;  %v5487_v17 = vadd.f32 %v3607_v63, %v3606_v34 }
 0x221   : > { %4283 = vpow2.f32 %v3533_v7  ;;  %v2428_v25 = vadd.f32 %v5416_v40, %v1995_v0  ;;  %v5485_v51 = vadd.f32 %v1996_v2, %v5456_v46  ;;  %3851 = vmatprep.mubr.bf16.mxu1 %v2530_v21  ;;  %v3609_v16 = vpop.f32.mrf.mxu0  ;;  %v1793_v2 = vadd.f32 %v5393_v37, %v5391_v20 }
 0x222   : > { %4285 = vrcp.f32 %v2487_v26  ;;  %v1998_v5 = vpop.f32.mrf.mxu1  ;;  %v4272_v42 = vpop.eup %4271 }
 0x223   : > { %v3534_v39 = vmul.f32 -1.442695, %v2428_v25  ;;  %v1999_v10 = vadd.f32 %v1998_v5, %v1886_v60  ;;  %v2488_v44 = vadd.f32 1.0, %v4272_v42  ;;  %v3610_v30 = vpop.f32.mrf.mxu0  ;;  %v4274_v18 = vpop.eup %4273 }
 0x224   : > { %v5489_v48 = vpop.f32.mrf.mxu1  ;;  %v5492_v56 = vadd.f32 %v3610_v30, %v3609_v16 }
 0x225   : > { %4287 = vpow2.f32 %v3534_v39  ;;  %v2429_v22 = vadd.f32 %v5416_v40, %v1999_v10  ;;  %v3612_v35 = vpop.f32.mrf.mxu0  ;;  %v1906_v10 = vadd.f32 %v5410_v12, %v1793_v2 }
 0x226   : > { %v4276_v46 = vpop.eup %4275  ;;  %v2004_v53 = vpop.f32.mrf.mxu1  ;;  %4289 = vrcp.f32 %v2488_v44 }
 0x227   : > { %v4278_v28 = vpop.eup %4277  ;;  %v3535_v50 = vmul.f32 -1.442695, %v2429_v22  ;;  %v2005_v57 = vadd.f32 %v2004_v53, %v5395_v19  ;;  %v2531_v32 = vpack.c.bf16 %v4276_v46, %v4274_v18  ;;  %v3613_v45 = vpop.f32.mrf.mxu0 }
 0x228   : > { %v2489_v3 = vadd.f32 1.0, %v4278_v28  ;;  %v2006_v23 = vpop.f32.mrf.mxu1  ;;  %v5502_v27 = vadd.f32 %v3613_v45, %v3612_v35 }
 0x229   : > { %4291 = vpow2.f32 %v3535_v50  ;;  %v2430_v55 = vadd.f32 %v5416_v40, %v2005_v57  ;;  %v5500_v14 = vadd.f32 %v2006_v23, %v5398_v36  ;;  %3852 = vmatmul.mubr.bf16.vlgmr.msra.gmra.mxu1 %v2531_v32  ;;  %v3615_v19 = vpop.f32.mrf.mxu0  ;;  %v5959_v32 = vld [vmem:[#allocation23_spill] sm:$0xff] }
 0x22a   : > { %v4280_v58 = vpop.eup %4279  ;;  %4293 = vrcp.f32 %v2489_v3  ;;  %v2008_v38 = vpop.f32.mrf.mxu1 }
 0x22b   : > { %v3536_v9 = vmul.f32 -1.442695, %v2430_v55  ;;  %v2009_v34 = vadd.f32 %v2008_v38, %v1896_v43  ;;  %v2490_v59 = vadd.f32 1.0, %v4280_v58  ;;  %v3616_v7 = vpop.f32.mrf.mxu0  ;;  %v4282_v0 = vpop.eup %4281 }
 0x22c   : > { %v2010_v41 = vpop.f32.mrf.mxu1  ;;  %v5508_v36 = vadd.f32 %v3616_v7, %v3615_v19 }
 0x22d   : > { %v2431_v21 = vadd.f32 %v5416_v40, %v2009_v34  ;;  %v5506_v26 = vadd.f32 %v2010_v41, %v5403_v61  ;;  %4295 = vpow2.f32 %v3536_v9  ;;  %v3618_v25 = vpop.f32.mrf.mxu0 }
 0x22e   : > { %v4284_v60 = vpop.eup %4283  ;;  %v2014_v63 = vpop.f32.mrf.mxu1  ;;  %4297 = vrcp.f32 %v2490_v59 }
 0x22f   : > { %v4286_v5 = vpop.eup %4285  ;;  %v2491_v16 = vadd.f32 1.0, %v4284_v60  ;;  %v3537_v42 = vmul.f32 -1.442695, %v2431_v21  ;;  %v2015_v39 = vadd.f32 %v2014_v63, %v5405_v15  ;;  %v3619_v30 = vpop.f32.mrf.mxu0 }
 0x230   : > { %v2016_v44 = vpop.f32.mrf.mxu1  ;;  %v2532_v61 = vpack.c.bf16 %v4286_v5, %v4282_v0  ;;  %v5518_v20 = vadd.f32 %v3619_v30, %v3618_v25 }
 0x231   : > { %4299 = vrcp.f32 %v2491_v16  ;;  %v2432_v18 = vadd.f32 %v5416_v40, %v2015_v39  ;;  %v5516_v22 = vadd.f32 %v2016_v44, %v5408_v52  ;;  %v3621_v31 = vpop.f32.mrf.mxu0 }
 0x232   : > { %v4288_v37 = vpop.eup %4287  ;;  %4301 = vpow2.f32 %v3537_v42  ;;  %3855 = vmatprep.mubr.bf16.mxu1 %v2532_v61  ;;  %v2018_v46 = vpop.f32.mrf.mxu1 }
 0x233   : > { %v3538_v15 = vmul.f32 -1.442695, %v2432_v18  ;;  %v2019_v53 = vadd.f32 %v2018_v46, %v1906_v10  ;;  %v2492_v12 = vadd.f32 1.0, %v4288_v37  ;;  %v3622_v28 = vpop.f32.mrf.mxu0  ;;  %v4290_v50 = vpop.eup %4289 }
 0x234   : > { %v2020_v35 = vpop.f32.mrf.mxu1  ;;  %v5524_v52 = vadd.f32 %v3622_v28, %v3621_v31 }
 0x235   : > { %v2433_v57 = vadd.f32 %v5416_v40, %v2019_v53  ;;  %v5522_v43 = vadd.f32 %v2020_v35, %v5959_v32  ;;  %4303 = vpow2.f32 %v3538_v15  ;;  %v3624_v45 = vpop.f32.mrf.mxu0 }
 0x236   : > { %v4292_v3 = vpop.eup %4291  ;;  %v3664_v23 = vpop.f32.mrf.mxu1  ;;  %4305 = vrcp.f32 %v2492_v12 }
 0x237   : > { %v4294_v55 = vpop.eup %4293  ;;  %v2493_v58 = vadd.f32 1.0, %v4292_v3  ;;  %v3539_v38 = vmul.f32 -1.442695, %v2433_v57  ;;  %v3625_v34 = vpop.f32.mrf.mxu0 }
 0x238   : > { %v2533_v19 = vpack.c.bf16 %v4294_v55, %v4290_v50  ;;  %v3665_v9 = vpop.f32.mrf.mxu1  ;;  %v5526_v41 = vadd.f32 %v3625_v34, %v3624_v45 }
 0x239   : > { %4307 = vrcp.f32 %v2493_v58  ;;  %v3666_v59 = vadd.f32 %v3665_v9, %v3664_v23  ;;  %v3627_v7 = vpop.f32.mrf.mxu0 }
 0x23a   : > { %4309 = vpow2.f32 %v3539_v38  ;;  %3856 = vmatmul.mubr.bf16.gmra.mxu1 %v2533_v19  ;;  %v3667_v40 = vpop.f32.mrf.mxu1  ;;  %v4296_v0 = vpop.eup %4295 }
 0x23b   : > { %v5529_v21 = vadd.f32 %v3666_v59, %v5473_v24  ;;  %v3628_v2 = vpop.f32.mrf.mxu0  ;;  %v4298_v63 = vpop.eup %4297  ;;  %v2494_v25 = vadd.f32 1.0, %v4296_v0 }
 0x23c   : > { %v3668_v60 = vpop.f32.mrf.mxu1  ;;  %v5531_v16 = vadd.f32 %v3628_v2, %v3627_v7 }
 0x23d   : > { %v3669_v5 = vadd.f32 %v3668_v60, %v3667_v40  ;;  %v3630_v10 = vpop.f32.mrf.mxu0  ;;  %4311 = vrcp.f32 %v2494_v25 }
 0x23e   : > { %v4300_v42 = vpop.eup %4299  ;;  %v3670_v39 = vpop.f32.mrf.mxu1 }
 0x23f   : > { %v4302_v44 = vpop.eup %4301  ;;  %v2534_v61 = vpack.c.bf16 %v4300_v42, %v4298_v63  ;;  %v5534_v30 = vadd.f32 %v3669_v5, %v5479_v13  ;;  %v3631_v46 = vpop.f32.mrf.mxu0 }
 0x240   : > { %v2495_v18 = vadd.f32 1.0, %v4302_v44  ;;  %v3671_v37 = vpop.f32.mrf.mxu1  ;;  %v5536_v31 = vadd.f32 %v3631_v46, %v3630_v10 }
 0x241   : > { %3859 = vmatprep.mubr.bf16.mxu1 %v2534_v61  ;;  %v3672_v24 = vadd.f32 %v3671_v37, %v3670_v39  ;;  %v3633_v53 = vpop.f32.mrf.mxu0 }
 0x242   : > { %4313 = vrcp.f32 %v2495_v18  ;;  %v3673_v15 = vpop.f32.mrf.mxu1  ;;  %v4304_v12 = vpop.eup %4303 }
 0x243   : > { %v5539_v35 = vadd.f32 %v3672_v24, %v5487_v17  ;;  %v3634_v50 = vpop.f32.mrf.mxu0  ;;  %v4306_v57 = vpop.eup %4305  ;;  %v2496_v13 = vadd.f32 1.0, %v4304_v12 }
 0x244   : > { %v3674_v28 = vpop.f32.mrf.mxu1  ;;  %v5541_v3 = vadd.f32 %v3634_v50, %v3633_v53 }
 0x245   : > { %v3675_v32 = vadd.f32 %v3674_v28, %v3673_v15  ;;  %v3636_v55 = vpop.f32.mrf.mxu0  ;;  %4315 = vrcp.f32 %v2496_v13 }
 0x246   : > { %v4308_v23 = vpop.eup %4307  ;;  %v3676_v45 = vpop.f32.mrf.mxu1 }
 0x247   : > { %v4310_v58 = vpop.eup %4309  ;;  %v2535_v38 = vpack.c.bf16 %v4308_v23, %v4306_v57  ;;  %v5544_v19 = vadd.f32 %v3675_v32, %v5492_v56  ;;  %v3637_v59 = vpop.f32.mrf.mxu0 }
 0x248   : > { %v2497_v9 = vadd.f32 1.0, %v4310_v58  ;;  %v3677_v34 = vpop.f32.mrf.mxu1  ;;  %v5546_v40 = vadd.f32 %v3637_v59, %v3636_v55 }
 0x249   : > { %3860 = vmatmul.mubr.bf16.gmra.mxu1 %v2535_v38  ;;  %v3678_v17 = vadd.f32 %v3677_v34, %v3676_v45  ;;  %v3639_v0 = vpop.f32.mrf.mxu0 }
 0x24a   : > { %4317 = vrcp.f32 %v2497_v9  ;;  %v3679_v7 = vpop.f32.mrf.mxu1  ;;  %v4312_v56 = vpop.eup %4311 }
 0x24b   : > { %v5549_v60 = vadd.f32 %v3678_v17, %v5502_v27  ;;  %v3640_v63 = vpop.f32.mrf.mxu0 }
 0x24c   : > { %v3680_v2 = vpop.f32.mrf.mxu1  ;;  %v3641_v5 = vadd.f32 %v3640_v63, %v3639_v0 }
 0x24d   : > { %v3681_v25 = vadd.f32 %v3680_v2, %v3679_v7  ;;  %v3642_v39 = vpop.f32.mrf.mxu0 }
 0x24e   : > { %v3682_v42 = vpop.f32.mrf.mxu1 }
 0x24f   : > { %v4314_v10 = vpop.eup %4313  ;;  %v5552_v44 = vadd.f32 %v3681_v25, %v5508_v36  ;;  %v3643_v37 = vpop.f32.mrf.mxu0 }
 0x250   : > { %v2536_v61 = vpack.c.bf16 %v4314_v10, %v4312_v56  ;;  %v3683_v18 = vpop.f32.mrf.mxu1  ;;  %v3644_v24 = vadd.f32 %v3643_v37, %v3642_v39 }
 0x251   : > { %v3684_v46 = vadd.f32 %v3683_v18, %v3682_v42  ;;  %v3645_v27 = vpop.f32.mrf.mxu0 }
 0x252   : > { %3863 = vmatprep.mubr.bf16.mxu1 %v2536_v61  ;;  %v3685_v15 = vpop.f32.mrf.mxu1  ;;  %v4316_v13 = vpop.eup %4315 }
 0x253   : > { %v5555_v53 = vadd.f32 %v3684_v46, %v5518_v20  ;;  %v3646_v28 = vpop.f32.mrf.mxu0 }
 0x254   : > { %v3686_v12 = vpop.f32.mrf.mxu1  ;;  %v3647_v57 = vadd.f32 %v3646_v28, %v3645_v27 }
 0x255   : > { %v3687_v50 = vadd.f32 %v3686_v12, %v3685_v15  ;;  %v3728_v23 = vpop.f32.mrf.mxu0 }
 0x256   : > { %v3688_v32 = vpop.f32.mrf.mxu1 }
 0x257   : > { %v4318_v36 = vpop.eup %4317  ;;  %v5558_v45 = vadd.f32 %v3687_v50, %v5524_v52  ;;  %v3729_v38 = vpop.f32.mrf.mxu0 }
 0x258   : > { %v2537_v55 = vpack.c.bf16 %v4318_v36, %v4316_v13  ;;  %v3689_v58 = vpop.f32.mrf.mxu1 }
 0x259   : > { %v3690_v9 = vadd.f32 %v3689_v58, %v3688_v32  ;;  %v3731_v59 = vpop.f32.mrf.mxu0 }
 0x25a   : > { %3864 = vmatmul.mubr.bf16.gmra.mxu1 %v2537_v55  ;;  %v3691_v34 = vpop.f32.mrf.mxu1 }
 0x25b   : > { %v5561_v20 = vadd.f32 %v3690_v9, %v5526_v41  ;;  %v3732_v7 = vpop.f32.mrf.mxu0 }
 0x25c   : > { %v3692_v17 = vpop.f32.mrf.mxu1 }
 0x25d   : > { %v3693_v0 = vadd.f32 %v3692_v17, %v3691_v34  ;;  %v3734_v63 = vpop.f32.mrf.mxu0 }
 0x25e   : > { %v3694_v2 = vpop.f32.mrf.mxu1 }
 0x25f   : > { %v5564_v25 = vadd.f32 %v3693_v0, %v5531_v16  ;;  %v3735_v56 = vpop.f32.mrf.mxu0 }
 0x260   : > { %v3695_v52 = vpop.f32.mrf.mxu1  ;;  %v3736_v17 = vadd.f32 %v3735_v56, %v3734_v63  ;;  %v4247_v63 = vld [vmem:[#allocation8 + $0x38] sm:$0xff]  }
 0x261   : > { %v3696_v42 = vadd.f32 %v3695_v52, %v3694_v2  ;;  %v3737_v10 = vpop.f32.mrf.mxu0  ;;  %v3730_v52 = vadd.f32 %v3729_v38, %v3728_v23  ;;  %3867 = vmatprep.subr.bf16.mxu0 %v4247_v63 }
 0x262   : > { %v3697_v39 = vpop.f32.mrf.mxu1  ;;  %3868 = vmatpush3.bf16.msra.mxu0 %v4247_v63 }
 0x263   : > { %v5567_v61 = vadd.f32 %v3696_v42, %v5536_v31  ;;  %v3738_v37 = vpop.f32.mrf.mxu0 }
 0x264   : > { %v3698_v18 = vpop.f32.mrf.mxu1 }
 0x265   : > { %v3699_v41 = vadd.f32 %v3698_v18, %v3697_v39  ;;  %v3740_v15 = vpop.f32.mrf.mxu0 }
 0x266   : > { %v3700_v46 = vpop.f32.mrf.mxu1 }
 0x267   : > { %v5570_v27 = vadd.f32 %v3699_v41, %v5541_v3  ;;  %v3741_v28 = vpop.f32.mrf.mxu0  ;;  %v2260_v41 = vadd.f32 %v3736_v17, %v5539_v35 }
 0x268   : > { %v3701_v12 = vpop.f32.mrf.mxu1 }
 0x269   : > { %v3702_v16 = vadd.f32 %v3701_v12, %v3700_v46  ;;  %v3743_v13 = vpop.f32.mrf.mxu0 }
 0x26a   : > { %v3703_v50 = vpop.f32.mrf.mxu1 }
 0x26b   : > { %v5573_v32 = vadd.f32 %v3702_v16, %v5546_v40  ;;  %v3744_v55 = vpop.f32.mrf.mxu0  ;;  %v3739_v40 = vadd.f32 %v3738_v37, %v3737_v10  ;;  %v4248_v37 = vld [vmem:[#allocation8 + $0x30] sm:$0xff]  }
 0x26c   : > { %v3704_v36 = vpop.f32.mrf.mxu1  ;;  %3869 = vmatprep.subr.bf16.mxu0 %v4248_v37 }
 0x26d   : > { %v3705_v31 = vadd.f32 %v3704_v36, %v3703_v50  ;;  %v3746_v9 = vpop.f32.mrf.mxu0  ;;  %v3733_v50 = vadd.f32 %v3732_v7, %v3731_v59  ;;  %v2252_v36 = vadd.f32 %v3730_v52, %v5529_v21  ;;  %v2263_v23 = vadd.f32 %v3739_v40, %v5544_v19  ;;  %3870 = vmatpush3.bf16.msra.mxu0 %v4248_v37 }
 0x26e   : > { %v3706_v58 = vpop.f32.mrf.mxu1  ;;  %v3742_v59 = vadd.f32 %v3741_v28, %v3740_v15  ;;  %v3745_v52 = vadd.f32 %v3744_v55, %v3743_v13  ;;  %v4249_v28 = vld [vmem:[#allocation8 + $0x28] sm:$0xff]   ;;  %v4250_v55 = vld [vmem:[#allocation8 + $0x20] sm:$0xff]  }
 0x26f   : > { %v5575_v34 = vadd.f32 %v3705_v31, %v3641_v5  ;;  %v3747_v2 = vpop.f32.mrf.mxu0  ;;  %v2255_v10 = vadd.f32 %v3733_v50, %v5534_v30  ;;  %3871 = vmatprep.subr.bf16.mxu0 %v4249_v28 }
 0x270   : > { %v3707_v0 = vpop.f32.mrf.mxu1  ;;  %v3748_v38 = vadd.f32 %v3747_v2, %v3746_v9 }
 0x271   : > { %v3708_v3 = vadd.f32 %v3707_v0, %v3706_v58  ;;  %v3749_v39 = vpop.f32.mrf.mxu0  ;;  %3872 = vmatpush3.bf16.msra.mxu0 %v4249_v28 }
 0x272   : > { %v3709_v42 = vpop.f32.mrf.mxu1  ;;  %3873 = vmatprep.subr.bf16.mxu0 %v4250_v55 }
 0x273   : > { %v5577_v18 = vadd.f32 %v3708_v3, %v3644_v24  ;;  %v3750_v12 = vpop.f32.mrf.mxu0 }
 0x274   : > { %v3710_v46 = vpop.f32.mrf.mxu1  ;;  %v3751_v17 = vadd.f32 %v3750_v12, %v3749_v39  ;;  %v2271_v12 = vadd.f32 %v3745_v52, %v5552_v44 }
 0x275   : > { %v3711_v16 = vadd.f32 %v3710_v46, %v3709_v42  ;;  %v3752_v31 = vpop.f32.mrf.mxu0  ;;  %v2268_v42 = vadd.f32 %v3742_v59, %v5549_v60  ;;  %3874 = vmatpush3.bf16.msra.mxu0 %v4250_v55 }
 0x276   : > { %v3821_v5 = vpop.f32.mrf.mxu1 }
 0x277   : > { %v5581_v56 = vadd.f32 %v3711_v16, %v3647_v57  ;;  %v5584_v58 = vadd.f32 %v3821_v5, %v2260_v41  ;;  %v3753_v0 = vpop.f32.mrf.mxu0  ;;  %v2276_v57 = vadd.f32 %v3748_v38, %v5555_v53  ;;  %v2279_v41 = vadd.f32 %v3751_v17, %v5558_v45 }
 0x278   : > { %v2348_v24 = vpop.f32.mrf.mxu1  ;;  %v3754_v16 = vadd.f32 %v3753_v0, %v3752_v31  ;;  %v4251_v0 = vld [vmem:[#allocation8 + $0x18] sm:$0xff]  }
 0x279   : > { %v5586_v35 = vadd.f32 %v2348_v24, %v2252_v36  ;;  %v3755_v7 = vpop.f32.mrf.mxu0  ;;  %3875 = vmatprep.subr.bf16.mxu0 %v4251_v0 }
 0x27a   : > { %v3822_v21 = vpop.f32.mrf.mxu1  ;;  %v2284_v24 = vadd.f32 %v3754_v16, %v5561_v20  ;;  %3876 = vmatpush3.bf16.msra.mxu0 %v4251_v0 }
 0x27b   : > { %v5590_v3 = vadd.f32 %v3822_v21, %v2263_v23  ;;  %v3756_v9 = vpop.f32.mrf.mxu0 }
 0x27c   : > { %v2351_v19 = vpop.f32.mrf.mxu1  ;;  %v3757_v38 = vadd.f32 %v3756_v9, %v3755_v7  ;;  %v4252_v9 = vld [vmem:[#allocation8 + $0x10] sm:$0xff]  }
 0x27d   : > { %v5592_v2 = vadd.f32 %v2351_v19, %v2255_v10  ;;  %v3758_v15 = vpop.f32.mrf.mxu0  ;;  %3877 = vmatprep.subr.bf16.mxu0 %v4252_v9 }
 0x27e   : > { %v3825_v30 = vpop.f32.mrf.mxu1  ;;  %v2287_v17 = vadd.f32 %v3757_v38, %v5564_v25  ;;  %3878 = vmatpush3.bf16.msra.mxu0 %v4252_v9  ;;  %v4253_v25 = vld [vmem:[#allocation8 + $0x8] sm:$0xff]  }
 0x27f   : > { %v5596_v40 = vadd.f32 %v3825_v30, %v2276_v57  ;;  %v3759_v39 = vpop.f32.mrf.mxu0  ;;  %3879 = vmatprep.subr.bf16.mxu0 %v4253_v25 }
 0x280   : > { %v2364_v53 = vpop.f32.mrf.mxu1  ;;  %v3760_v50 = vadd.f32 %v3759_v39, %v3758_v15 }
 0x281   : > { %v5598_v46 = vadd.f32 %v2364_v53, %v2268_v42  ;;  %v3761_v60 = vpop.f32.mrf.mxu0 }
 0x282   : > { %v3826_v13 = vpop.f32.mrf.mxu1  ;;  %v2292_v36 = vadd.f32 %v3760_v50, %v5567_v61  ;;  %3880 = vmatpush3.bf16.msra.mxu0 %v4253_v25 }
 0x283   : > { %v5602_v5 = vadd.f32 %v3826_v13, %v2279_v41  ;;  %v3762_v63 = vpop.f32.mrf.mxu0  ;;  %v4254_v13 = vld [vmem:[#allocation8] sm:$0xff]  }
 0x284   : > { %v2367_v45 = vpop.f32.mrf.mxu1  ;;  %v3763_v10 = vadd.f32 %v3762_v63, %v3761_v60  ;;  %3881 = vmatprep.subr.bf16.mxu0 %v4254_v13 }
 0x285   : > { %v5604_v23 = vadd.f32 %v2367_v45, %v2271_v12  ;;  %v3764_v31 = vpop.f32.mrf.mxu0 }
 0x286   : > { %v3829_v44 = vpop.f32.mrf.mxu1  ;;  %v2295_v59 = vadd.f32 %v3763_v10, %v5570_v27  ;;  %3882 = vmatpush3.bf16.msra.mxu0 %v4254_v13 }
 0x287   : > { %v5608_v21 = vadd.f32 %v3829_v44, %v2292_v36  ;;  %v3765_v37 = vpop.f32.mrf.mxu0  ;;  %v5632_v44 = vld [vmem:[#allocation11] ss:$0 sm:$0xff] }
 0x288   : > { %v2380_v61 = vpop.f32.mrf.mxu1  ;;  %v3766_v19 = vadd.f32 %v3765_v37, %v3764_v31 }
 0x289   : > { %v5610_v57 = vadd.f32 %v2380_v61, %v2284_v24  ;;  %v5613_v20 = vpop.f32.mrf.mxu0 }
 0x28a   : > { %v3830_v7 = vpop.f32.mrf.mxu1  ;;  %v2300_v15 = vadd.f32 %v3766_v19, %v5573_v32 }
 0x28b   : > { %v5615_v52 = vadd.f32 %v3830_v7, %v2295_v59  ;;  %v5617_v30 = vpop.f32.mrf.mxu0 }
 0x28c   : > { %v2383_v42 = vpop.f32.mrf.mxu1 }
 0x28d   : > { %v5619_v27 = vadd.f32 %v2383_v42, %v2287_v17  ;;  %v3770_v41 = vpop.f32.mrf.mxu0 }
 0x28e   : > { %v3833_v28 = vpop.f32.mrf.mxu1 }
 0x28f   : > { %v3771_v39 = vpop.f32.mrf.mxu0 }
 0x290   : > { %v2396_v53 = vpop.f32.mrf.mxu1  ;;  %v3772_v16 = vadd.f32 %v3771_v39, %v3770_v41 }
 0x291   : > { %v5622_v12 = vadd.f32 %v2396_v53, %v2300_v15  ;;  %v3773_v50 = vpop.f32.mrf.mxu0 }
 0x292   : > { %v2308_v60 = vadd.f32 %v3772_v16, %v5577_v18  ;;  %v3834_v63 = vpop.f32.mrf.mxu1 }
 0x293   : > { %v3774_v55 = vpop.f32.mrf.mxu0 }
 0x294   : > { %v3775_v36 = vadd.f32 %v3774_v55, %v3773_v50  ;;  %v5625_v32 = vadd.f32 %v3833_v28, %v2308_v60  ;;  %v5630_v24 = vpop.f32.mrf.mxu1 }
 0x296   : > { %v2311_v45 = vadd.f32 %v3775_v36, %v5581_v56 }
 0x298   : > { %v5628_v38 = vadd.f32 %v3834_v63, %v2311_v45 }
 0x2e9   : > { %v3853_v10 = vpop.f32.mrf.mxu1 }
 0x2ea   : > { %v2645_v31 = vadd.f32 %v3853_v10, %v5432_v33 }
 0x2eb   : > { %v2636_v0 = vpop.f32.mrf.mxu1 }
 0x2ec   : > { %v2708_v18 = vadd.f32 %v5632_v44, %v2645_v31  ;;  %v2637_v59 = vadd.f32 %v2636_v0, %v5422_v29 }
 0x2ed   : > { %v3854_v61 = vpop.f32.mrf.mxu1 }
 0x2ee   : > { %v3551_v37 = vmul.f32 -1.442695, %v2708_v18  ;;  %v2706_v17 = vadd.f32 %v5632_v44, %v2637_v59  ;;  %v2648_v56 = vadd.f32 %v3854_v61, %v5436_v47 }
 0x2ef   : > { %v2639_v19 = vpop.f32.mrf.mxu1 }
 0x2f0   : > { %4319 = vpow2.f32 %v3551_v37  ;;  %v3549_v7 = vmul.f32 -1.442695, %v2706_v17  ;;  %v2709_v9 = vadd.f32 %v5632_v44, %v2648_v56  ;;  %v2640_v42 = vadd.f32 %v2639_v19, %v5426_v62  ;;  %v5960_v37 = vld [vmem:[#allocation21_spill] sm:$0xff]  ;;  %v5961_v17 = vld [vmem:[#allocation22_spill] sm:$0xff] }
 0x2f1   : > { %v1775_v56 = vadd.f32 %v5961_v17, %v5960_v37 }
 0x2f2   : > { %4321 = vpow2.f32 %v3549_v7  ;;  %v3552_v33 = vmul.f32 -1.442695, %v2709_v9  ;;  %v2707_v15 = vadd.f32 %v5632_v44, %v2640_v42 }
 0x2f3   : > { %v1888_v7 = vadd.f32 %v5460_v4, %v1775_v56 }
 0x2f4   : > { %4323 = vpow2.f32 %v3552_v33  ;;  %v3550_v28 = vmul.f32 -1.442695, %v2707_v15 }
 0x2f5   : > { %v2001_v42 = vadd.f32 %v5489_v48, %v1888_v7 }
 0x2f6   : > { %4325 = vpow2.f32 %v3550_v28 }
 0x2fa   : > { %v3857_v29 = vpop.f32.mrf.mxu1 }
 0x2fb   : > { %v2661_v41 = vadd.f32 %v3857_v29, %v5458_v11 }
 0x2fc   : > { %v2652_v25 = vpop.f32.mrf.mxu1 }
 0x2fd   : > { %v4320_v53 = vpop.eup %4319  ;;  %v2712_v47 = vadd.f32 %v5632_v44, %v2661_v41  ;;  %v2653_v39 = vadd.f32 %v2652_v25, %v5444_v6 }
 0x2fe   : > { %v2772_v16 = vadd.f32 1.0, %v4320_v53  ;;  %v3858_v50 = vpop.f32.mrf.mxu1 }
 0x2ff   : > { %v4322_v13 = vpop.eup %4321  ;;  %v3555_v62 = vmul.f32 -1.442695, %v2712_v47  ;;  %v2710_v60 = vadd.f32 %v5632_v44, %v2653_v39  ;;  %v2664_v55 = vadd.f32 %v3858_v50, %v5464_v1 }
 0x300   : > { %4327 = vrcp.f32 %v2772_v16  ;;  %v2770_v36 = vadd.f32 1.0, %v4322_v13  ;;  %v2655_v45 = vpop.f32.mrf.mxu1 }
 0x301   : > { %v4324_v63 = vpop.eup %4323  ;;  %4329 = vpow2.f32 %v3555_v62  ;;  %v3553_v11 = vmul.f32 -1.442695, %v2710_v60  ;;  %v2713_v10 = vadd.f32 %v5632_v44, %v2664_v55  ;;  %v2656_v31 = vadd.f32 %v2655_v45, %v5448_v8 }
 0x302   : > { %4331 = vrcp.f32 %v2770_v36  ;;  %v2773_v6 = vadd.f32 1.0, %v4324_v63 }
 0x303   : > { %v4326_v0 = vpop.eup %4325  ;;  %4333 = vpow2.f32 %v3553_v11  ;;  %v3556_v18 = vmul.f32 -1.442695, %v2713_v10  ;;  %v2711_v59 = vadd.f32 %v5632_v44, %v2656_v31 }
 0x304   : > { %4335 = vrcp.f32 %v2773_v6  ;;  %v2771_v61 = vadd.f32 1.0, %v4326_v0 }
 0x305   : > { %4337 = vpow2.f32 %v3556_v18  ;;  %v3554_v1 = vmul.f32 -1.442695, %v2711_v59 }
 0x306   : > { %4339 = vrcp.f32 %v2771_v61 }
 0x307   : > { %4341 = vpow2.f32 %v3554_v1 }
 0x309   : > { %v3861_v19 = vpop.f32.mrf.mxu1 }
 0x30a   : > { %v2677_v8 = vadd.f32 %v3861_v19, %v5485_v51 }
 0x30b   : > { %v2668_v9 = vpop.f32.mrf.mxu1 }
 0x30c   : > { %v2716_v33 = vadd.f32 %v5632_v44, %v2677_v8  ;;  %v2669_v15 = vadd.f32 %v2668_v9, %v5471_v49 }
 0x30d   : > { %v4328_v28 = vpop.eup %4327  ;;  %v3862_v29 = vpop.f32.mrf.mxu1 }
 0x30e   : > { %v4330_v41 = vpop.eup %4329  ;;  %v3559_v25 = vmul.f32 -1.442695, %v2716_v33  ;;  %v2714_v53 = vadd.f32 %v5632_v44, %v2669_v15  ;;  %v2680_v47 = vadd.f32 %v3862_v29, %v2001_v42 }
 0x30f   : > { %v4332_v39 = vpop.eup %4331  ;;  %v2776_v16 = vadd.f32 1.0, %v4330_v41  ;;  %v2671_v50 = vpop.f32.mrf.mxu1 }
 0x310   : > { %v4334_v4 = vpop.eup %4333  ;;  %4343 = vpow2.f32 %v3559_v25  ;;  %v3557_v51 = vmul.f32 -1.442695, %v2714_v53  ;;  %v2717_v13 = vadd.f32 %v5632_v44, %v2680_v47  ;;  %v2672_v48 = vadd.f32 %v2671_v50, %v5477_v54 }
 0x311   : > { %v4336_v62 = vpop.eup %4335  ;;  %4345 = vrcp.f32 %v2776_v16  ;;  %v2774_v49 = vadd.f32 1.0, %v4334_v4 }
 0x312   : > { %v4338_v60 = vpop.eup %4337  ;;  %4347 = vpow2.f32 %v3557_v51  ;;  %v3560_v55 = vmul.f32 -1.442695, %v2717_v13  ;;  %v2715_v36 = vadd.f32 %v5632_v44, %v2672_v48  ;;  %v2819_v45 = vpack.c.bf16 %v4336_v62, %v4328_v28 }
 0x313   : > { %v4340_v63 = vpop.eup %4339  ;;  %4349 = vrcp.f32 %v2774_v49  ;;  %v2777_v11 = vadd.f32 1.0, %v4338_v60 }
 0x314   : > { %v4342_v10 = vpop.eup %4341  ;;  %4351 = vpow2.f32 %v3560_v55  ;;  %v3558_v31 = vmul.f32 -1.442695, %v2715_v36  ;;  %v2818_v6 = vpack.c.bf16 %v4340_v63, %v4332_v39 }
 0x315   : > { %4353 = vrcp.f32 %v2777_v11  ;;  %v2775_v0 = vadd.f32 1.0, %v4342_v10 }
 0x316   : > { %4355 = vpow2.f32 %v3558_v31  ;;  %3883 = vmatprep.mubr.bf16.mxu0 %v2818_v6 }
 0x317   : > { %4357 = vrcp.f32 %v2775_v0  ;;  %3884 = vmatmul.mubr.bf16.vlgmr.msra.gmra.mxu0 %v2819_v45 }
 0x31a   : > { %v3865_v54 = vpop.f32.mrf.mxu1 }
 0x31b   : > { %v2693_v18 = vadd.f32 %v3865_v54, %v5516_v22 }
 0x31c   : > { %v2684_v59 = vpop.f32.mrf.mxu1 }
 0x31d   : > { %v4344_v61 = vpop.eup %4343  ;;  %v2720_v1 = vadd.f32 %v5632_v44, %v2693_v18  ;;  %v2685_v37 = vadd.f32 %v2684_v59, %v5500_v14 }
 0x31e   : > { %v4346_v17 = vpop.eup %4345  ;;  %v2780_v56 = vadd.f32 1.0, %v4344_v61  ;;  %v3866_v19 = vpop.f32.mrf.mxu1 }
 0x31f   : > { %v4348_v7 = vpop.eup %4347  ;;  %v3563_v8 = vmul.f32 -1.442695, %v2720_v1  ;;  %v2718_v9 = vadd.f32 %v5632_v44, %v2685_v37  ;;  %v2696_v42 = vadd.f32 %v3866_v19, %v5522_v43 }
 0x320   : > { %v4350_v33 = vpop.eup %4349  ;;  %4359 = vrcp.f32 %v2780_v56  ;;  %v2778_v15 = vadd.f32 1.0, %v4348_v7  ;;  %v2687_v28 = vpop.f32.mrf.mxu1 }
 0x321   : > { %v4352_v22 = vpop.eup %4351  ;;  %4361 = vpow2.f32 %v3563_v8  ;;  %v3561_v29 = vmul.f32 -1.442695, %v2718_v9  ;;  %v2721_v41 = vadd.f32 %v5632_v44, %v2696_v42  ;;  %v2688_v14 = vadd.f32 %v2687_v28, %v5506_v26 }
 0x322   : > { %v4354_v25 = vpop.eup %4353  ;;  %4363 = vrcp.f32 %v2778_v15  ;;  %v2781_v53 = vadd.f32 1.0, %v4352_v22 }
 0x323   : > { %v4356_v47 = vpop.eup %4355  ;;  %4365 = vpow2.f32 %v3561_v29  ;;  %v3564_v39 = vmul.f32 -1.442695, %v2721_v41  ;;  %v2719_v16 = vadd.f32 %v5632_v44, %v2688_v14  ;;  %v2821_v43 = vpack.c.bf16 %v4354_v25, %v4346_v17  ;;  %v5669_v17 = vld [vmem:[#allocation13] ss:$0 sm:$0xff] }
 0x324   : > { %v4358_v50 = vpop.eup %4357  ;;  %4367 = vrcp.f32 %v2781_v53  ;;  %v2779_v4 = vadd.f32 1.0, %v4356_v47 }
 0x325   : > { %4369 = vpow2.f32 %v3564_v39  ;;  %v3562_v51 = vmul.f32 -1.442695, %v2719_v16  ;;  %v2820_v13 = vpack.c.bf16 %v4358_v50, %v4350_v33 }
 0x326   : > { %4371 = vrcp.f32 %v2779_v4 }
 0x327   : > { %4373 = vpow2.f32 %v3562_v51  ;;  %3887 = vmatprep.mubr.bf16.mxu0 %v2820_v13 }
 0x328   : > { %3888 = vmatmul.mubr.bf16.gmra.mxu0 %v2821_v43 }
 0x32d   : > { %v4360_v26 = vpop.eup %4359 }
 0x32e   : > { %v4362_v48 = vpop.eup %4361 }
 0x32f   : > { %v4364_v62 = vpop.eup %4363  ;;  %v2784_v60 = vadd.f32 1.0, %v4362_v48 }
 0x330   : > { %v4366_v49 = vpop.eup %4365 }
 0x331   : > { %v4368_v55 = vpop.eup %4367  ;;  %v2782_v45 = vadd.f32 1.0, %v4366_v49  ;;  %4375 = vrcp.f32 %v2784_v60 }
 0x332   : > { %v4370_v36 = vpop.eup %4369  ;;  %v2823_v44 = vpack.c.bf16 %v4368_v55, %v4360_v26 }
 0x333   : > { %v4372_v63 = vpop.eup %4371  ;;  %v2785_v11 = vadd.f32 1.0, %v4370_v36 }
 0x334   : > { %v4374_v10 = vpop.eup %4373  ;;  %v2822_v31 = vpack.c.bf16 %v4372_v63, %v4364_v62 }
 0x335   : > { %4377 = vrcp.f32 %v2785_v11  ;;  %v2783_v6 = vadd.f32 1.0, %v4374_v10 }
 0x336   : > { %4379 = vrcp.f32 %v2782_v45  ;;  %3891 = vmatprep.mubr.bf16.mxu0 %v2822_v31 }
 0x337   : > { %4381 = vrcp.f32 %v2783_v6  ;;  %3892 = vmatmul.mubr.bf16.gmra.mxu0 %v2823_v44 }
 0x33e   : > { %v4376_v0 = vpop.eup %4375 }
 0x342   : > { %v4378_v54 = vpop.eup %4377 }
 0x343   : > { %v4380_v18 = vpop.eup %4379  ;;  %v2825_v59 = vpack.c.bf16 %v4378_v54, %v4376_v0 }
 0x344   : > { %v4382_v61 = vpop.eup %4381 }
 0x345   : > { %v2824_v1 = vpack.c.bf16 %v4382_v61, %v4380_v18 }
 0x347   : > { %3895 = vmatprep.mubr.bf16.mxu0 %v2824_v1 }
 0x348   : > { %3896 = vmatmul.mubr.bf16.gmra.mxu0 %v2825_v59 }
 0x3d7   : > { %v3885_v37 = vpop.f32.mrf.mxu0 }
 0x3d8   : > { %v2933_v56 = vadd.f32 %v3885_v37, %v5584_v58 }
 0x3d9   : > { %v2924_v19 = vpop.f32.mrf.mxu0 }
 0x3da   : > { %v2925_v7 = vadd.f32 %v2924_v19, %v5586_v35  ;;  %v5674_v8 = vadd.f32 %v5669_v17, %v2933_v56 }
 0x3db   : > { %v3886_v9 = vpop.f32.mrf.mxu0 }
 0x3dc   : > { %v2936_v42 = vadd.f32 %v3886_v9, %v5590_v3  ;;  %3014 = vmax.xlane.f32.xlu1 %v5674_v8  ;;  %v5679_v33 = vadd.f32 %v5669_v17, %v2925_v7 }
 0x3dd   : > { %v2927_v15 = vpop.f32.mrf.mxu0 }
 0x3de   : > { %v2928_v28 = vadd.f32 %v2927_v15, %v5592_v2  ;;  %3010 = vmax.xlane.f32.xlu0 %v5679_v33  ;;  %v5684_v58 = vadd.f32 %v5669_v17, %v2936_v42 }
 0x3e0   : > { %3016 = vmax.xlane.f32.xlu1 %v5684_v58  ;;  %v5688_v35 = vadd.f32 %v5669_v17, %v2928_v28 }
 0x3e2   : > { %3012 = vmax.xlane.f32.xlu0 %v5688_v35 }
 0x3e8   : > { %v3889_v3 = vpop.f32.mrf.mxu0 }
 0x3e9   : > { %v2949_v22 = vadd.f32 %v3889_v3, %v5596_v40 }
 0x3ea   : > { %v2940_v29 = vpop.f32.mrf.mxu0 }
 0x3eb   : > { %v2941_v41 = vadd.f32 %v2940_v29, %v5598_v46  ;;  %v5694_v2 = vadd.f32 %v5669_v17, %v2949_v22 }
 0x3ec   : > { %v3890_v14 = vpop.f32.mrf.mxu0 }
 0x3ed   : > { %v2952_v25 = vadd.f32 %v3890_v14, %v5602_v5  ;;  %3022 = vmax.xlane.f32.xlu0 %v5694_v2  ;;  %v5703_v16 = vadd.f32 %v5669_v17, %v2941_v41 }
 0x3ee   : > { %v2943_v53 = vpop.f32.mrf.mxu0 }
 0x3ef   : > { %v2944_v47 = vadd.f32 %v2943_v53, %v5604_v23  ;;  %v5700_v39 = vadd.f32 %v5669_v17, %v2952_v25 }
 0x3f1   : > { %3024 = vmax.xlane.f32.xlu1 %v5700_v39  ;;  %3018 = vmax.xlane.f32.xlu0 %v5703_v16  ;;  %v5708_v40 = vadd.f32 %v5669_v17, %v2944_v47 }
 0x3f5   : > { %3020 = vmax.xlane.f32.xlu1 %v5708_v40 }
 0x3f7   : > { %v3893_v46 = vpop.f32.mrf.mxu0 }
 0x3f8   : > { %v2965_v5 = vadd.f32 %v3893_v46, %v5608_v21 }
 0x3f9   : > { %v2956_v43 = vpop.f32.mrf.mxu0 }
 0x3fa   : > { %v2957_v23 = vadd.f32 %v2956_v43, %v5610_v57  ;;  %v5714_v50 = vadd.f32 %v5669_v17, %v2965_v5  ;;  %v3769_v57 = vadd.f32 %v5617_v30, %v5613_v20 }
 0x3fb   : > { %v3894_v4 = vpop.f32.mrf.mxu0 }
 0x3fc   : > { %v2968_v51 = vadd.f32 %v3894_v4, %v5615_v52  ;;  %3030 = vmax.xlane.f32.xlu0 %v5714_v50  ;;  %v5723_v62 = vadd.f32 %v5669_v17, %v2957_v23 }
 0x3fd   : > { %v2959_v13 = vpop.f32.mrf.mxu0 }
 0x3fe   : > { %v2960_v26 = vadd.f32 %v2959_v13, %v5619_v27  ;;  %v5720_v48 = vadd.f32 %v5669_v17, %v2968_v51  ;;  %v2303_v27 = vadd.f32 %v3769_v57, %v5575_v34 }
 0x400   : > { %3032 = vmax.xlane.f32.xlu1 %v5720_v48  ;;  %3026 = vmax.xlane.f32.xlu0 %v5723_v62  ;;  %v5728_v21 = vadd.f32 %v5669_v17, %v2960_v26  ;;  %v2400_v36 = vadd.f32 %v5630_v24, %v2303_v27 }
 0x404   : > { %3028 = vmax.xlane.f32.xlu1 %v5728_v21 }
 0x408   : > { %v3897_v52 = vpop.f32.mrf.mxu0 }
 0x409   : > { %v2981_v45 = vadd.f32 %v3897_v52, %v5625_v32 }
 0x40a   : > { %v2972_v49 = vpop.f32.mrf.mxu0 }
 0x40b   : > { %v2973_v60 = vadd.f32 %v2972_v49, %v5622_v12  ;;  %v5746_v34 = vadd.f32 %v5669_v17, %v2981_v45 }
 0x40c   : > { %v3898_v55 = vpop.f32.mrf.mxu0 }
 0x40d   : > { %v5738_v44 = vadd.f32 %v5669_v17, %v2973_v60  ;;  %v2984_v20 = vadd.f32 %v3898_v55, %v5628_v38 }
 0x40e   : > { %v2975_v63 = vpop.f32.mrf.mxu0 }
 0x40f   : > { %v2976_v11 = vadd.f32 %v2975_v63, %v2400_v36  ;;  %3034 = vmax.xlane.f32.xlu0 %v5738_v44  ;;  %v5751_v12 = vadd.f32 %v5669_v17, %v2984_v20 }
 0x411   : > { %v5743_v30 = vadd.f32 %v5669_v17, %v2976_v11 }
 0x413   : > { %3036 = vmax.xlane.f32.xlu1 %v5743_v30  ;;  %3038 = vmax.xlane.f32.xlu0 %v5746_v34 }
 0x417   : > { %3040 = vmax.xlane.f32.xlu1 %v5751_v12 }
 0x465   : > { %v3015_v32 = vpop.xlane.xlu1 %3014 }
 0x466   : > { %v5755_v24 = vsub.f32 %v5674_v8, %v3015_v32 }
 0x467   : > { %v3011_v38 = vpop.xlane.xlu0 %3010 }
 0x468   : > { %v3062_v10 = vmul.f32 1.442695, %v5755_v24  ;;  %v5759_v31 = vsub.f32 %v5679_v33, %v3011_v38 }
 0x469   : > { %v3017_v6 = vpop.xlane.xlu1 %3016 }
 0x46a   : > { %4383 = vpow2.f32 %v3062_v10  ;;  %v3058_v0 = vmul.f32 1.442695, %v5759_v31  ;;  %v5763_v54 = vsub.f32 %v5684_v58, %v3017_v6 }
 0x46b   : > { %v3013_v18 = vpop.xlane.xlu0 %3012 }
 0x46c   : > { %v3064_v59 = vmul.f32 1.442695, %v5763_v54  ;;  %v5767_v61 = vsub.f32 %v5688_v35, %v3013_v18  ;;  %4385 = vpow2.f32 %v3058_v0 }
 0x46e   : > { %4387 = vpow2.f32 %v3064_v59  ;;  %v3060_v1 = vmul.f32 1.442695, %v5767_v61 }
 0x470   : > { %4389 = vpow2.f32 %v3060_v1 }
 0x476   : > { %v3023_v37 = vpop.xlane.xlu0 %3022 }
 0x477   : > { %v4384_v17 = vpop.eup %4383  ;;  %v5771_v56 = vsub.f32 %v5694_v2, %v3023_v37 }
 0x478   : > { %3094 = vadd.xlane.f32.xlu0 %v4384_v17 }
 0x479   : > { %v3070_v19 = vmul.f32 1.442695, %v5771_v56  ;;  %v4386_v7 = vpop.eup %4385 }
 0x47a   : > { %v3025_v8 = vpop.xlane.xlu1 %3024  ;;  %v3019_v9 = vpop.xlane.xlu0 %3018 }
 0x47b   : > { %v4388_v42 = vpop.eup %4387  ;;  %4391 = vpow2.f32 %v3070_v19  ;;  %v5775_v33 = vsub.f32 %v5700_v39, %v3025_v8  ;;  %v5778_v15 = vsub.f32 %v5703_v16, %v3019_v9 }
 0x47c   : > { %3096 = vadd.xlane.f32.xlu1 %v4388_v42  ;;  %3090 = vadd.xlane.f32.xlu0 %v4386_v7 }
 0x47d   : > { %v3072_v28 = vmul.f32 1.442695, %v5775_v33  ;;  %v3066_v58 = vmul.f32 1.442695, %v5778_v15  ;;  %v4390_v3 = vpop.eup %4389 }
 0x47e   : > { %v3021_v35 = vpop.xlane.xlu1 %3020 }
 0x47f   : > { %4393 = vpow2.f32 %v3072_v28  ;;  %v5783_v22 = vsub.f32 %v5708_v40, %v3021_v35 }
 0x480   : > { %4395 = vpow2.f32 %v3066_v58  ;;  %3092 = vadd.xlane.f32.xlu1 %v4390_v3 }
 0x481   : > { %v3068_v29 = vmul.f32 1.442695, %v5783_v22 }
 0x483   : > { %4397 = vpow2.f32 %v3068_v29 }
 0x485   : > { %v3031_v41 = vpop.xlane.xlu0 %3030 }
 0x486   : > { %v5787_v2 = vsub.f32 %v5714_v50, %v3031_v41 }
 0x488   : > { %v4392_v14 = vpop.eup %4391  ;;  %v3078_v25 = vmul.f32 1.442695, %v5787_v2 }
 0x489   : > { %3102 = vadd.xlane.f32.xlu0 %v4392_v14  ;;  %v3033_v53 = vpop.xlane.xlu1 %3032  ;;  %v3027_v47 = vpop.xlane.xlu0 %3026 }
 0x48a   : > { %4399 = vpow2.f32 %v3078_v25  ;;  %v5791_v39 = vsub.f32 %v5720_v48, %v3033_v53  ;;  %v5794_v16 = vsub.f32 %v5723_v62, %v3027_v47 }
 0x48c   : > { %v4394_v40 = vpop.eup %4393  ;;  %v3080_v46 = vmul.f32 1.442695, %v5791_v39  ;;  %v3074_v5 = vmul.f32 1.442695, %v5794_v16 }
 0x48d   : > { %v4396_v43 = vpop.eup %4395  ;;  %3104 = vadd.xlane.f32.xlu1 %v4394_v40  ;;  %v3029_v23 = vpop.xlane.xlu1 %3028 }
 0x48e   : > { %4401 = vpow2.f32 %v3080_v46  ;;  %3098 = vadd.xlane.f32.xlu0 %v4396_v43  ;;  %v5799_v50 = vsub.f32 %v5728_v21, %v3029_v23 }
 0x48f   : > { %4403 = vpow2.f32 %v3074_v5 }
 0x490   : > { %v4398_v4 = vpop.eup %4397  ;;  %v3076_v51 = vmul.f32 1.442695, %v5799_v50 }
 0x491   : > { %3100 = vadd.xlane.f32.xlu1 %v4398_v4 }
 0x492   : > { %4405 = vpow2.f32 %v3076_v51 }
 0x497   : > { %v4400_v13 = vpop.eup %4399 }
 0x498   : > { %v3035_v26 = vpop.xlane.xlu0 %3034  ;;  %3110 = vadd.xlane.f32.xlu0 %v4400_v13 }
 0x499   : > { %v5803_v48 = vsub.f32 %v5738_v44, %v3035_v26 }
 0x49b   : > { %v4402_v62 = vpop.eup %4401  ;;  %v3082_v57 = vmul.f32 1.442695, %v5803_v48 }
 0x49c   : > { %v4404_v52 = vpop.eup %4403  ;;  %v3037_v27 = vpop.xlane.xlu1 %3036  ;;  %3112 = vadd.xlane.f32.xlu1 %v4402_v62 }
 0x49d   : > { %v3039_v49 = vpop.xlane.xlu0 %3038  ;;  %4407 = vpow2.f32 %v3082_v57  ;;  %v5807_v21 = vsub.f32 %v5743_v30, %v3037_v27  ;;  %3106 = vadd.xlane.f32.xlu0 %v4404_v52 }
 0x49e   : > { %v5810_v60 = vsub.f32 %v5746_v34, %v3039_v49 }
 0x49f   : > { %v4406_v55 = vpop.eup %4405  ;;  %v3084_v36 = vmul.f32 1.442695, %v5807_v21 }
 0x4a0   : > { %v3086_v45 = vmul.f32 1.442695, %v5810_v60  ;;  %v3041_v44 = vpop.xlane.xlu1 %3040  ;;  %3108 = vadd.xlane.f32.xlu1 %v4406_v55 }
 0x4a1   : > { %4409 = vpow2.f32 %v3084_v36  ;;  %v5815_v63 = vsub.f32 %v5751_v12, %v3041_v44 }
 0x4a2   : > { %4411 = vpow2.f32 %v3086_v45 }
 0x4a3   : > { %v3088_v11 = vmul.f32 1.442695, %v5815_v63 }
 0x4a5   : > { %4413 = vpow2.f32 %v3088_v11 }
 0x4aa   : > { %v4408_v20 = vpop.eup %4407 }
 0x4ab   : > { %3114 = vadd.xlane.f32.xlu0 %v4408_v20 }
 0x4ae   : > { %v4410_v30 = vpop.eup %4409 }
 0x4af   : > { %v4412_v34 = vpop.eup %4411  ;;  %3116 = vadd.xlane.f32.xlu1 %v4410_v30 }
 0x4b0   : > { %3118 = vadd.xlane.f32.xlu0 %v4412_v34 }
 0x4b2   : > { %v4414_v32 = vpop.eup %4413 }
 0x4b3   : > { %3120 = vadd.xlane.f32.xlu1 %v4414_v32 }
 0x501   : > { %v3095_v38 = vpop.xlane.xlu0 %3094 }
 0x502   : > { %4415 = vlog2.f32 %v3095_v38 }
 0x505   : > { %v3097_v10 = vpop.xlane.xlu1 %3096  ;;  %v3091_v6 = vpop.xlane.xlu0 %3090 }
 0x506   : > { %4417 = vlog2.f32 %v3097_v10 }
 0x507   : > { %4419 = vlog2.f32 %v3091_v6 }
 0x509   : > { %v3093_v12 = vpop.xlane.xlu1 %3092 }
 0x50a   : > { %4421 = vlog2.f32 %v3093_v12 }
 0x50f   : > { %v4416_v0 = vpop.eup %4415 }
 0x510   : > { %v3127_v18 = vmul.f32 0.6931472, %v4416_v0 }
 0x512   : > { %v3156_v59 = vsub.f32 %v5755_v24, %v3127_v18  ;;  %v3103_v1 = vpop.xlane.xlu0 %3102 }
 0x513   : > { %v4418_v37 = vpop.eup %4417  ;;  %4423 = vlog2.f32 %v3103_v1 }
 0x514   : > { %v4420_v17 = vpop.eup %4419  ;;  %3172 = vst [vmem:[%s5820_s15 + $0x10] sm:$0xff] %v3156_v59  ;;  %v3129_v19 = vmul.f32 0.6931472, %v4418_v37 }
 0x515   : > { %v3123_v7 = vmul.f32 0.6931472, %v4420_v17 }
 0x516   : > { %v3157_v8 = vsub.f32 %v5763_v54, %v3129_v19  ;;  %v3105_v9 = vpop.xlane.xlu1 %3104 }
 0x517   : > { %v4422_v42 = vpop.eup %4421  ;;  %v3154_v28 = vsub.f32 %v5759_v31, %v3123_v7  ;;  %4425 = vlog2.f32 %v3105_v9  ;;  %v3099_v24 = vpop.xlane.xlu0 %3098 }
 0x518   : > { %3173 = vst [vmem:[%s5820_s15 + $0x18] sm:$0xff] %v3157_v8  ;;  %v3125_v58 = vmul.f32 0.6931472, %v4422_v42  ;;  %4427 = vlog2.f32 %v3099_v24 }
 0x519   : > { %3170 = vst [vmem:[%s5820_s15] sm:$0xff] %v3154_v28 }
 0x51a   : > { %v3155_v35 = vsub.f32 %v5767_v61, %v3125_v58  ;;  %v3101_v3 = vpop.xlane.xlu1 %3100 }
 0x51b   : > { %4429 = vlog2.f32 %v3101_v3 }
 0x51c   : > { %3171 = vst [vmem:[%s5820_s15 + $0x8] sm:$0xff] %v3155_v35 }
 0x520   : > { %v4424_v29 = vpop.eup %4423 }
 0x521   : > { %v3135_v41 = vmul.f32 0.6931472, %v4424_v29  ;;  %v3111_v54 = vpop.xlane.xlu0 %3110 }
 0x522   : > { %4431 = vlog2.f32 %v3111_v54 }
 0x523   : > { %v3160_v14 = vsub.f32 %v5771_v56, %v3135_v41 }
 0x524   : > { %v4426_v31 = vpop.eup %4425 }
 0x525   : > { %v4428_v25 = vpop.eup %4427  ;;  %3176 = vst [vmem:[%s5820_s15 + $0x30] sm:$0xff] %v3160_v14  ;;  %v3137_v53 = vmul.f32 0.6931472, %v4426_v31  ;;  %v3113_v47 = vpop.xlane.xlu1 %3112 }
 0x526   : > { %v3131_v40 = vmul.f32 0.6931472, %v4428_v25  ;;  %4433 = vlog2.f32 %v3113_v47  ;;  %v3107_v61 = vpop.xlane.xlu0 %3106 }
 0x527   : > { %v3161_v46 = vsub.f32 %v5775_v33, %v3137_v53  ;;  %4435 = vlog2.f32 %v3107_v61 }
 0x528   : > { %v4430_v5 = vpop.eup %4429  ;;  %v3158_v43 = vsub.f32 %v5778_v15, %v3131_v40 }
 0x529   : > { %3177 = vst [vmem:[%s5820_s15 + $0x38] sm:$0xff] %v3161_v46  ;;  %v3133_v23 = vmul.f32 0.6931472, %v4430_v5  ;;  %v3109_v56 = vpop.xlane.xlu1 %3108 }
 0x52a   : > { %3174 = vst [vmem:[%s5820_s15 + $0x20] sm:$0xff] %v3158_v43  ;;  %4437 = vlog2.f32 %v3109_v56 }
 0x52b   : > { %v3159_v4 = vsub.f32 %v5783_v22, %v3133_v23 }
 0x52d   : > { %3175 = vst [vmem:[%s5820_s15 + $0x28] sm:$0xff] %v3159_v4 }
 0x52f   : > { %v4432_v51 = vpop.eup %4431 }
 0x530   : > { %v3143_v13 = vmul.f32 0.6931472, %v4432_v51 }
 0x532   : > { %v3164_v26 = vsub.f32 %v5787_v2, %v3143_v13 }
 0x533   : > { %v4434_v33 = vpop.eup %4433 }
 0x534   : > { %v4436_v62 = vpop.eup %4435  ;;  %3180 = vst [vmem:[%s5820_s15 + $0x50] sm:$0xff] %v3164_v26  ;;  %v3145_v57 = vmul.f32 0.6931472, %v4434_v33  ;;  %v3115_v15 = vpop.xlane.xlu0 %3114 }
 0x535   : > { %v3139_v52 = vmul.f32 0.6931472, %v4436_v62  ;;  %4439 = vlog2.f32 %v3115_v15 }
 0x536   : > { %v3165_v27 = vsub.f32 %v5791_v39, %v3145_v57 }
 0x537   : > { %v4438_v49 = vpop.eup %4437  ;;  %v3162_v55 = vsub.f32 %v5794_v16, %v3139_v52 }
 0x538   : > { %3181 = vst [vmem:[%s5820_s15 + $0x58] sm:$0xff] %v3165_v27  ;;  %v3141_v22 = vmul.f32 0.6931472, %v4438_v49  ;;  %v3117_v36 = vpop.xlane.xlu1 %3116 }
 0x539   : > { %3178 = vst [vmem:[%s5820_s15 + $0x40] sm:$0xff] %v3162_v55  ;;  %4441 = vlog2.f32 %v3117_v36  ;;  %v3119_v2 = vpop.xlane.xlu0 %3118 }
 0x53a   : > { %v3163_v45 = vsub.f32 %v5799_v50, %v3141_v22  ;;  %4443 = vlog2.f32 %v3119_v2 }
 0x53c   : > { %3179 = vst [vmem:[%s5820_s15 + $0x48] sm:$0xff] %v3163_v45  ;;  %v3121_v44 = vpop.xlane.xlu1 %3120 }
 0x53d   : > { %4445 = vlog2.f32 %v3121_v44 }
 0x542   : > { %v4440_v39 = vpop.eup %4439 }
 0x543   : > { %v3147_v11 = vmul.f32 0.6931472, %v4440_v39 }
 0x545   : > { %v3166_v16 = vsub.f32 %v5803_v48, %v3147_v11 }
 0x546   : > { %v4442_v20 = vpop.eup %4441 }
 0x547   : > { %v4444_v30 = vpop.eup %4443  ;;  %3182 = vst [vmem:[%s5820_s15 + $0x60] sm:$0xff] %v3166_v16  ;;  %v3149_v34 = vmul.f32 0.6931472, %v4442_v20 }
 0x548   : > { %v3151_v32 = vmul.f32 0.6931472, %v4444_v30 }
 0x549   : > { %v3167_v38 = vsub.f32 %v5807_v21, %v3149_v34 }
 0x54a   : > { %v4446_v50 = vpop.eup %4445  ;;  %v3168_v10 = vsub.f32 %v5810_v60, %v3151_v32 }
 0x54b   : > { %3183 = vst [vmem:[%s5820_s15 + $0x68] sm:$0xff] %v3167_v38  ;;  %v3153_v6 = vmul.f32 0.6931472, %v4446_v50  ;;  %3193 = sbr.rel (!%p5962_p11) target bundleno = 1387 (0x56b), region = 80 }
 0x54c   : > { %3184 = vst [vmem:[%s5820_s15 + $0x70] sm:$0xff] %v3168_v10 }
 0x54d   : > { %v3169_v12 = vsub.f32 %v5815_v63, %v3153_v6 }
 0x54f   : > { %3185 = vst [vmem:[%s5820_s15 + $0x78] sm:$0xff] %v3169_v12 }
 0x550   : > { %s5972_s19 = smov (!%p3196_p13, %s3195_s19), 16 }
 0x551   : > { %s5857_s10 = sshll.u32 %s5972_s19, 7 }
 0x552   : > { %s3200_s17 = ssub.s32 2048, %s5857_s10 }
 0x553   : > { %3201 = vsyncadd %s3187_s23, %s3200_s17  ;;  %p3577_p5 = scmp.ne.s32.totalorder %s5857_s10, 0  ;;  %s3583_s13 = sshll.u32 %s4785_s28, 11 }
 0x554   : > { %s5867_s16 = scalar_lea.hbm %s5921_s7, %s3583_s13  ;;  %s3206_s29 = sshll.u32 %s5820_s15, 4  ;;  %s5870_s29 = int_to_ptr.vmem [resolvable:$true] %s3206_s29 }
 0x555   : > { %s4629_s21 = scalar_lea.vmem %s5870_s29, %s5857_s10  ;;  %s4721_s9 = smov [#allocation14]  }
 0x556   : > { %p4630_p12 = scmp.ne.s32.totalorder %s5870_s29, %s4629_s21  ;;  %s4633_s20 = sshll.u32 %s4721_s9, 4  ;;  %s4634_s20 = int_to_ptr.vmem [resolvable:$false] %s4633_s20 }
 0x557   : > { %s4635_s28 = scalar_lea.vmem %s4634_s20, 4096  ;;  %p4636_p1 = scmp.lt.s32.totalorder %s5870_s29, %s4634_s20 }
 0x558   : > { %p4631_p0 = pnand %p4630_p12, %p3577_p5  ;;  %p4637_p3 = scmp.lt.s32.totalorder %s4635_s28, %s4629_s21 }
 0x55a   : > { %p4632_p10 = pneg %p4631_p0  ;;  %p4638_p2 = por %p4637_p3, %p4636_p1 }
 0x55c   : > { %p4639_p7 = pnand %p4638_p2, %p4632_p10 }
 0x55e   : > { %4642 = shalt.err (!%p4639_p7)
}
 0x55f   : > { %s4643_s18 = scalar_lea.hbm %s5867_s16, %s5857_s10  ;;  %s4647_s1 = scalar_lea.hbm %s5921_s7, 4864 }
 0x560   : > { %p4644_p9 = scmp.ne.s32.totalorder %s5867_s16, %s4643_s18  ;;  %p4648_p6 = scmp.lt.s32.totalorder %s5867_s16, %s5921_s7 }
 0x561   : > { %p4649_p11 = scmp.lt.s32.totalorder %s4647_s1, %s4643_s18 }
 0x562   : > { %p4645_p8 = pnand %p4644_p9, %p3577_p5 }
 0x563   : > { %p4650_p13 = por %p4649_p11, %p4648_p6 }
 0x564   : > { %p4646_p4 = pneg %p4645_p8 }
 0x566   : > { %p4651_p12 = pnand %p4650_p13, %p4646_p4 }
 0x568   : > { %4654 = shalt.err (!%p4651_p12)
}
 0x569   : > { %s4722_s13 = smov 128   ;;  %s4723_s11 = smov 8  }
 0x56a   : > { %3212 = dma.vmem_to_hbm [thread:$0]  (%p3577_p5), %s5870_s29, %s5857_s10, %s5867_s16, %s3187_s23, %s4722_s13, %s4722_s13, %s4723_s11  }
 0x56b PF: > { %p3995_p0 = scmp.ge.s32.totalorder %s4705_s27, 2  ;;  %s3221_s22 = sand.u32 1, %s4693_s24  }
 0x56c   : > { %p5963_p10 = scmp.ne.s32.totalorder %s5935_s14, 0  ;;  %s3222_s21 = scalar_lea.sflag [#allocation4], %s3221_s22 }
 0x56e   : > { %p3980_p1 = pnand %p3995_p0, %p5963_p10 }
 0x570   : > { %p3981_p3 = pneg %p3980_p1 }
 0x572   : > { %4688 = dma.done.wait (%p3981_p3), %s3222_s21, 2048  }
 0x573   : > { %4690 = vsyncadd (%p3981_p3), %s3222_s21, 4294965248  ;;  %s5964_s9 = sld [smem:[#allocation20_spill]]  ;;  %p23_p2 = scmp.ge.s32.totalorder %s4789_s30, 5  }
 0x574   : > { %s5965_s24 = smov %s4697_s25  ;;  %s5966_s25 = smov %s4701_s26 }
 0x575   : > { %s5968_s27 = smov %s4789_s30  ;;  %25 = sbr.rel (!%p23_p2) target bundleno = 10 (0xa), region = 117 }
 0x579   : > { %s5967_s26 = smov %s5964_s9 }
 0x57a   :  { %3227 = vsyncpa [#allocation3], 1 }
 0x57b   :  { %3229 = vsyncpa [#allocation3 + $0x1], 1 }
 0x57c   :  { %3230 = vsyncpa [#allocation6], 1 }
 0x57d   :  { %3231 = vsyncpa [#allocation9], 1 }
 0x57e   :  { %3232 = vsyncpa [#allocation12], 1 }
 0x57f   :  { %3233 = vsyncpa [#allocation4], 1 }
 0x580   :  { %3235 = vsyncpa [#allocation4 + $0x1], 1 }

</bundles_post_ra>
